<compile_context>
chip_gen: v6e
topology: v6e:2x2x1
jax: 0.10.0
libtpu: 0.0.40
codegen_flags: <defaults>
</compile_context>

<pallas_src>
import functools

import jax
import jax.numpy as jnp
from jax.experimental import pallas as pl
from jax.experimental.pallas import tpu as pltpu

LANE = 128


def _round_up(v, m):
    return pl.cdiv(v, m) * m


def gcn_propagate_kernel(slope, adj_ref, scale_ref, sup_ref, b_ref, o_ref):
    """One row tile of  leaky_relu( scale * (adj_q @ sup) + b ).

    adj_ref   : (TM, Np)  int8  quantized adjacency row tile (streamed)
    scale_ref : (TM, 1)   f32   per-row dequantization scales
    sup_ref   : (Np, F)   bf16  dense support (act @ W), resident in VMEM
    b_ref     : (1, F)    f32   bias
    o_ref     : (TM, F)         output row tile
    """
    # Dequantize on the VPU (int8 -> f32 -> bf16, both converts natively
    # supported); keep the MXU in bf16 with f32 accumulation.
    adj = adj_ref[...].astype(jnp.float32).astype(jnp.bfloat16)
    acc = jnp.dot(adj, sup_ref[...], preferred_element_type=jnp.float32)
    acc = acc * scale_ref[...] + b_ref[...]
    o_ref[...] = jnp.where(acc > 0, acc, slope * acc).astype(o_ref.dtype)


def quantize_adjacency(adj, n_pad):
    """Pad adj to (n_pad, n_pad) and symmetric-quantize each row to int8.

    Returns (adj_q int8 (n_pad, n_pad), scale f32 (n_pad, 1)) with
    adj ~= scale * adj_q and exact 0 -> 0 (padding invariant preserved).
    In a real pipeline this is a one-time preprocessing step cached across
    forward calls.
    """
    n, m = adj.shape
    adj_p = jnp.pad(adj.astype(jnp.float32), ((0, n_pad - n), (0, n_pad - m)))
    amax = jnp.max(jnp.abs(adj_p), axis=1, keepdims=True)
    scale = jnp.where(amax > 0.0, amax / 127.0, 1.0)
    adj_q = jnp.clip(jnp.round(adj_p / scale), -127.0, 127.0).astype(jnp.int8)
    return adj_q, scale.astype(jnp.float32)


def _propagate(adj_q, scale, sup, bias, *, out_dtype, tm, slope=0.25):
    """out = leaky_relu(scale * (adj_q @ sup) + bias) via one pallas_call."""
    n_pad = adj_q.shape[0]
    f = sup.shape[1]
    n_tiles = n_pad // tm
    out_bytes = jnp.dtype(out_dtype).itemsize

    # VMEM footprint: double-buffered int8 adj tile + resident bf16 support
    # + output tile + the in-kernel dequantized temporary.
    vmem_est = (2 * tm * n_pad             # adj tile, int8, 2 buffers
                + 2 * n_pad * f * 2        # resident support, 2 buffers
                + 2 * tm * f * out_bytes   # output tile, 2 buffers
                + tm * n_pad * 4           # dequant temporary
                + 2 * tm * 4 + f * 4)
    vmem_limit = int(min(100 * 1024 * 1024,
                         max(32 * 1024 * 1024, int(1.5 * vmem_est))))

    return pl.pallas_call(
        functools.partial(gcn_propagate_kernel, slope),
        out_shape=jax.ShapeDtypeStruct((n_pad, f), out_dtype),
        grid_spec=pltpu.PrefetchScalarGridSpec(
            num_scalar_prefetch=0,
            grid=(n_tiles,),
            in_specs=[
                pl.BlockSpec((tm, n_pad), lambda i: (i, 0)),  # adj_q (streamed)
                pl.BlockSpec((tm, 1), lambda i: (i, 0)),      # row scales
                pl.BlockSpec((n_pad, f), lambda i: (0, 0)),   # support (resident)
                pl.BlockSpec((1, f), lambda i: (0, 0)),       # bias (resident)
            ],
            out_specs=pl.BlockSpec((tm, f), lambda i: (i, 0)),
        ),
        compiler_params=pltpu.CompilerParams(
            # No cross-step state: row tiles are independent, so the grid can
            # shard across TensorCores on v7x; no-op on single-TC v5e/v6e.
            dimension_semantics=("parallel",),
            vmem_limit_bytes=vmem_limit,
        ),
        cost_estimate=pl.CostEstimate(
            flops=2 * n_pad * n_pad * f,
            transcendentals=0,
            bytes_accessed=(n_pad * n_pad              # int8 adj
                            + n_pad * f * 2            # bf16 support
                            + n_pad * f * out_bytes    # output
                            + n_pad * 4 + f * 4),
        ),
    )(adj_q, scale, sup, bias)


def graph_gcn_forward(x, adj, params, *, tm=256):
    """GraphGCN.forward: gc1 -> leaky_relu -> dropout(id) -> gc2 -> leaky_relu."""
    n, _ = x.shape
    nhid = params["w1"].shape[1]
    dfin = params["w2"].shape[1]

    n_pad = _round_up(n, tm)
    f1 = _round_up(nhid, LANE)
    f2 = _round_up(dfin, LANE)

    # 8-bit adjacency: the dominant HBM stream, read once per layer.
    adj_q, scale = quantize_adjacency(adj, n_pad)

    # Lane-padded bf16 parameters / inputs for the small dense projections.
    x_p = jnp.pad(x, ((0, n_pad - n), (0, 0))).astype(jnp.bfloat16)
    w1_p = jnp.pad(params["w1"], ((0, 0), (0, f1 - nhid))).astype(jnp.bfloat16)
    w2_p = jnp.pad(params["w2"], ((0, f1 - nhid), (0, f2 - dfin))).astype(jnp.bfloat16)
    b1_p = jnp.pad(params["b1"], (0, f1 - nhid)).reshape(1, f1).astype(jnp.float32)
    b2_p = jnp.pad(params["b2"], (0, f2 - dfin)).reshape(1, f2).astype(jnp.float32)

    # Layer 1: tiny dense projection in XLA, O(N^2) propagation in Pallas.
    sup1 = jnp.dot(x_p, w1_p, preferred_element_type=jnp.float32).astype(jnp.bfloat16)
    h1 = _propagate(adj_q, scale, sup1, b1_p, out_dtype=jnp.bfloat16, tm=tm)

    # dropout == identity (eval mode).

    # Layer 2.
    sup2 = jnp.dot(h1, w2_p, preferred_element_type=jnp.float32).astype(jnp.bfloat16)
    out = _propagate(adj_q, scale, sup2, b2_p, out_dtype=jnp.float32, tm=tm)

    return out[:n, :dfin]


def xavier_normal(key, shape):
    fan_in, fan_out = shape
    std = (2.0 / (fan_in + fan_out)) ** 0.5
    return std * jax.random.normal(key, shape, dtype=jnp.float32)


def init_params(key, nfeat, nhid, dim_final):
    k1, k2 = jax.random.split(key)
    return {
        "w1": xavier_normal(k1, (nfeat, nhid)),
        "b1": jnp.zeros((nhid,), jnp.float32),
        "w2": xavier_normal(k2, (nhid, dim_final)),
        "b2": jnp.zeros((dim_final,), jnp.float32),
    }


if __name__ == "__main__":
    # Small shapes consistent with the module: npatient nodes, nfeat features.
    npatient, nfeat, nhid, dim_final = 64, 32, 32, 16

    key = jax.random.PRNGKey(0)
    kx, kadj, kp = jax.random.split(key, 3)

    x = jax.random.normal(kx, (npatient, nfeat), dtype=jnp.float32)

    # Symmetric row-normalized adjacency (dense; torch.sparse.mm on this
    # adjacency equals the same dense matmul).
    a = jax.random.uniform(kadj, (npatient, npatient), dtype=jnp.float32)
    a = (a > 0.7).astype(jnp.float32)
    a = jnp.maximum(a, a.T) + jnp.eye(npatient, dtype=jnp.float32)
    adj = a / jnp.sum(a, axis=1, keepdims=True)

    params = init_params(kp, nfeat, nhid, dim_final)

    fwd = jax.jit(graph_gcn_forward)
    out = jax.block_until_ready(fwd(x, adj, params))

    # Pure-JAX f32 reference (module uses leaky_relu slope 0.25). Tolerance
    # covers bf16 activations/support + int8 per-row adjacency quantization.
    def ref_layer(x_, w_, b_, adj_):
        y = adj_ @ (x_ @ w_) + b_
        return jnp.where(y > 0, y, 0.25 * y)

    ref = ref_layer(ref_layer(x, params["w1"], params["b1"], adj),
                    params["w2"], params["b2"], adj)
    assert out.shape == (npatient, dim_final)
    max_err = float(jnp.max(jnp.abs(out - ref)))
    assert jnp.allclose(out, ref, atol=3e-2, rtol=3e-2), max_err

    print("KERNEL_OK")
</pallas_src>

<mosaic_0001>
module attributes {stable_mosaic.version = 11 : i64} {
  func.func @gcn_propagate_kernel(%arg0: i32, %arg1: memref<256x256xi8, #tpu.memory_space<vmem>>, %arg2: memref<256x1xf32, #tpu.memory_space<vmem>>, %arg3: memref<256x128xbf16, #tpu.memory_space<vmem>>, %arg4: memref<1x128xf32, #tpu.memory_space<vmem>>, %arg5: memref<256x128xbf16, #tpu.memory_space<vmem>>) attributes {dimension_semantics = [#tpu.dimension_semantics<parallel>], iteration_bounds = array<i64: 1>, scalar_prefetch = 0 : i64, scratch_operands = 0 : i64, tpu.core_type = #tpu.core_type<tc>, window_params = [{transform_indices = @transform_0, window_bounds = array<i64: 256, 256>}, {transform_indices = @transform_1, window_bounds = array<i64: 256, 1>}, {pipeline_mode = #tpu.pipeline_mode<synchronous>, transform_indices = @transform_2, window_bounds = array<i64: 256, 128>}, {pipeline_mode = #tpu.pipeline_mode<synchronous>, transform_indices = @transform_3, window_bounds = array<i64: 1, 128>}, {transform_indices = @transform_4, window_bounds = array<i64: 256, 128>}]} {
    %c0 = arith.constant 0 : index
    %c0_0 = arith.constant 0 : index
    %0 = vector.load %arg1[%c0, %c0_0] : memref<256x256xi8, #tpu.memory_space<vmem>>, vector<256x256xi8>
    %1 = arith.sitofp %0 : vector<256x256xi8> to vector<256x256xf32>
    %2 = arith.truncf %1 : vector<256x256xf32> to vector<256x256xbf16>
    %c0_1 = arith.constant 0 : index
    %c0_2 = arith.constant 0 : index
    %3 = vector.load %arg3[%c0_1, %c0_2] : memref<256x128xbf16, #tpu.memory_space<vmem>>, vector<256x128xbf16>
    %cst = arith.constant dense<0.000000e+00> : vector<256x128xf32>
    %4 = tpu.matmul %2, %3, %cst {dimension_numbers = #tpu.dot_dimension_numbers<[1], [0], [0], [1], [0, 0, 1, 1], [], []>} : vector<256x256xbf16>, vector<256x128xbf16>, vector<256x128xf32> -> vector<256x128xf32>
    %c0_3 = arith.constant 0 : index
    %c0_4 = arith.constant 0 : index
    %5 = vector.load %arg2[%c0_3, %c0_4] : memref<256x1xf32, #tpu.memory_space<vmem>>, vector<256x1xf32>
    %6 = vector.broadcast %5 : vector<256x1xf32> to vector<256x128xf32>
    %7 = arith.mulf %4, %6 : vector<256x128xf32>
    %c0_5 = arith.constant 0 : index
    %c0_6 = arith.constant 0 : index
    %8 = vector.load %arg4[%c0_5, %c0_6] : memref<1x128xf32, #tpu.memory_space<vmem>>, vector<1x128xf32>
    %9 = vector.broadcast %8 : vector<1x128xf32> to vector<256x128xf32>
    %10 = arith.addf %7, %9 : vector<256x128xf32>
    %cst_7 = arith.constant 0.000000e+00 : f32
    %11 = vector.broadcast %cst_7 : f32 to vector<256x128xf32>
    %12 = arith.cmpf ogt, %10, %11 : vector<256x128xf32>
    %cst_8 = arith.constant 2.500000e-01 : f32
    %13 = vector.broadcast %cst_8 : f32 to vector<256x128xf32>
    %14 = arith.mulf %13, %10 : vector<256x128xf32>
    %15 = arith.select %12, %10, %14 : vector<256x128xi1>, vector<256x128xf32>
    %16 = arith.truncf %15 : vector<256x128xf32> to vector<256x128xbf16>
    %c0_9 = arith.constant 0 : index
    %c0_10 = arith.constant 0 : index
    %17 = vector.load %arg5[%c0_9, %c0_10] : memref<256x128xbf16, #tpu.memory_space<vmem>>, vector<256x128xbf16>
    tpu.vector_store %arg5[%c0_9, %c0_10], %16 {strides = array<i32>} : memref<256x128xbf16, #tpu.memory_space<vmem>>, vector<256x128xbf16>,
    return
  }
  func.func @transform_0(%arg0: i32) -> (i32, i32) {
    %c0_i32 = arith.constant 0 : i32
    %c0_i32_0 = arith.constant 0 : i32
    return %arg0, %c0_i32 : i32, i32
  }
  func.func @transform_1(%arg0: i32) -> (i32, i32) {
    %c0_i32 = arith.constant 0 : i32
    %c0_i32_0 = arith.constant 0 : i32
    return %arg0, %c0_i32 : i32, i32
  }
  func.func @transform_2(%arg0: i32) -> (i32, i32) {
    %c0_i32 = arith.constant 0 : i32
    %c0_i32_0 = arith.constant 0 : i32
    %c0_i32_1 = arith.constant 0 : i32
    return %c0_i32, %c0_i32_0 : i32, i32
  }
  func.func @transform_3(%arg0: i32) -> (i32, i32) {
    %c0_i32 = arith.constant 0 : i32
    %c0_i32_0 = arith.constant 0 : i32
    %c0_i32_1 = arith.constant 0 : i32
    return %c0_i32, %c0_i32_0 : i32, i32
  }
  func.func @transform_4(%arg0: i32) -> (i32, i32) {
    %c0_i32 = arith.constant 0 : i32
    %c0_i32_0 = arith.constant 0 : i32
    return %arg0, %c0_i32 : i32, i32
  }
}

module attributes {stable_mosaic.version = 11 : i64} {
  func.func @gcn_propagate_kernel(%arg0: i32, %arg1: memref<256x256xi8, #tpu.memory_space<vmem>>, %arg2: memref<256x1xf32, #tpu.memory_space<vmem>>, %arg3: memref<256x128xbf16, #tpu.memory_space<vmem>>, %arg4: memref<1x128xf32, #tpu.memory_space<vmem>>, %arg5: memref<256x128xf32, #tpu.memory_space<vmem>>) attributes {dimension_semantics = [#tpu.dimension_semantics<parallel>], iteration_bounds = array<i64: 1>, scalar_prefetch = 0 : i64, scratch_operands = 0 : i64, tpu.core_type = #tpu.core_type<tc>, window_params = [{transform_indices = @transform_0, window_bounds = array<i64: 256, 256>}, {transform_indices = @transform_1, window_bounds = array<i64: 256, 1>}, {pipeline_mode = #tpu.pipeline_mode<synchronous>, transform_indices = @transform_2, window_bounds = array<i64: 256, 128>}, {pipeline_mode = #tpu.pipeline_mode<synchronous>, transform_indices = @transform_3, window_bounds = array<i64: 1, 128>}, {transform_indices = @transform_4, window_bounds = array<i64: 256, 128>}]} {
    %c0 = arith.constant 0 : index
    %c0_0 = arith.constant 0 : index
    %0 = vector.load %arg1[%c0, %c0_0] : memref<256x256xi8, #tpu.memory_space<vmem>>, vector<256x256xi8>
    %1 = arith.sitofp %0 : vector<256x256xi8> to vector<256x256xf32>
    %2 = arith.truncf %1 : vector<256x256xf32> to vector<256x256xbf16>
    %c0_1 = arith.constant 0 : index
    %c0_2 = arith.constant 0 : index
    %3 = vector.load %arg3[%c0_1, %c0_2] : memref<256x128xbf16, #tpu.memory_space<vmem>>, vector<256x128xbf16>
    %cst = arith.constant dense<0.000000e+00> : vector<256x128xf32>
    %4 = tpu.matmul %2, %3, %cst {dimension_numbers = #tpu.dot_dimension_numbers<[1], [0], [0], [1], [0, 0, 1, 1], [], []>} : vector<256x256xbf16>, vector<256x128xbf16>, vector<256x128xf32> -> vector<256x128xf32>
    %c0_3 = arith.constant 0 : index
    %c0_4 = arith.constant 0 : index
    %5 = vector.load %arg2[%c0_3, %c0_4] : memref<256x1xf32, #tpu.memory_space<vmem>>, vector<256x1xf32>
    %6 = vector.broadcast %5 : vector<256x1xf32> to vector<256x128xf32>
    %7 = arith.mulf %4, %6 : vector<256x128xf32>
    %c0_5 = arith.constant 0 : index
    %c0_6 = arith.constant 0 : index
    %8 = vector.load %arg4[%c0_5, %c0_6] : memref<1x128xf32, #tpu.memory_space<vmem>>, vector<1x128xf32>
    %9 = vector.broadcast %8 : vector<1x128xf32> to vector<256x128xf32>
    %10 = arith.addf %7, %9 : vector<256x128xf32>
    %cst_7 = arith.constant 0.000000e+00 : f32
    %11 = vector.broadcast %cst_7 : f32 to vector<256x128xf32>
    %12 = arith.cmpf ogt, %10, %11 : vector<256x128xf32>
    %cst_8 = arith.constant 2.500000e-01 : f32
    %13 = vector.broadcast %cst_8 : f32 to vector<256x128xf32>
    %14 = arith.mulf %13, %10 : vector<256x128xf32>
    %15 = arith.select %12, %10, %14 : vector<256x128xi1>, vector<256x128xf32>
    %c0_9 = arith.constant 0 : index
    %c0_10 = arith.constant 0 : index
    %16 = vector.load %arg5[%c0_9, %c0_10] : memref<256x128xf32, #tpu.memory_space<vmem>>, vector<256x128xf32>
    tpu.vector_store %arg5[%c0_9, %c0_10], %15 {strides = array<i32>} : memref<256x128xf32, #tpu.memory_space<vmem>>, vector<256x128xf32>,
    return
  }
  func.func @transform_0(%arg0: i32) -> (i32, i32) {
    %c0_i32 = arith.constant 0 : i32
    %c0_i32_0 = arith.constant 0 : i32
    return %arg0, %c0_i32 : i32, i32
  }
  func.func @transform_1(%arg0: i32) -> (i32, i32) {
    %c0_i32 = arith.constant 0 : i32
    %c0_i32_0 = arith.constant 0 : i32
    return %arg0, %c0_i32 : i32, i32
  }
  func.func @transform_2(%arg0: i32) -> (i32, i32) {
    %c0_i32 = arith.constant 0 : i32
    %c0_i32_0 = arith.constant 0 : i32
    %c0_i32_1 = arith.constant 0 : i32
    return %c0_i32, %c0_i32_0 : i32, i32
  }
  func.func @transform_3(%arg0: i32) -> (i32, i32) {
    %c0_i32 = arith.constant 0 : i32
    %c0_i32_0 = arith.constant 0 : i32
    %c0_i32_1 = arith.constant 0 : i32
    return %c0_i32, %c0_i32_0 : i32, i32
  }
  func.func @transform_4(%arg0: i32) -> (i32, i32) {
    %c0_i32 = arith.constant 0 : i32
    %c0_i32_0 = arith.constant 0 : i32
    return %arg0, %c0_i32 : i32, i32
  }
}

</mosaic_0001>

<bundles_post_ra>
// kernel: graph_gcn_forward.3
= control target key start
LH: loop header
LB: loop body
LE: loop exit
PB: predicated region body
PF: predicated region fallthrough
CT: control target
= control target key end

     0   :  { %v914_v1 = vmov 0   ;;  %s1304_s2 = inlined_call_operand.vmem [shape: bf16[256,128], index: 2, kind: input, shape index: {}]   ;;  %s1305_s0 = inlined_call_operand.vmem [shape: s8[256,256], index: 0, kind: input, shape index: {}]   ;;  %s1306_s1 = inlined_call_operand.vmem [shape: f32[256,1], index: 1, kind: input, shape index: {}]   ;;  %s1307_s3 = inlined_call_operand.vmem [shape: f32[1,128], index: 3, kind: input, shape index: {}]   ;;  %s1308_s4 = inlined_call_operand.vmem [shape: f32[256,128], index: 4, kind: output, shape index: {}]  }
   0x1   :  { %v898_v0 = vld [vmem:[%s1304_s2 + $0x78] sm:$0xff]   ;;  %897 = vset.pattern.permute.xlu1 %v914_v1  ;;  %896 = vset.pattern.permute.xlu0 %v914_v1  ;;  %v900_v3 = vld [vmem:[%s1304_s2 + $0x70] sm:$0xff]   ;;  %v902_v5 = vld [vmem:[%s1304_s2 + $0x68] sm:$0xff]  }
   0x2   :  { %v899_v2 = vld [vmem:[%s1304_s2 + $0x38] sm:$0xff]   ;;  %767 = vmatprep.subr.bf16.mxu0 %v898_v0  ;;  %879 = vmatprep.subr.bf16.mxu1 %v898_v0  ;;  %v901_v4 = vld [vmem:[%s1304_s2 + $0x30] sm:$0xff]   ;;  %v903_v6 = vld [vmem:[%s1304_s2 + $0x28] sm:$0xff]  }
   0x3   :  { %768 = vmatpush3.bf16.msra.mxu0 %v899_v2  ;;  %887 = vmatpush3.bf16.msra.mxu1 %v899_v2  ;;  %v904_v7 = vld [vmem:[%s1304_s2 + $0x60] sm:$0xff]   ;;  %v906_v9 = vld [vmem:[%s1304_s2 + $0x58] sm:$0xff]   ;;  %v908_v11 = vld [vmem:[%s1304_s2 + $0x50] sm:$0xff]  }
   0x4   :  { %769 = vmatprep.subr.bf16.mxu0 %v900_v3  ;;  %880 = vmatprep.subr.bf16.mxu1 %v900_v3  ;;  %v905_v8 = vld [vmem:[%s1304_s2 + $0x20] sm:$0xff]   ;;  %v907_v10 = vld [vmem:[%s1304_s2 + $0x18] sm:$0xff]   ;;  %v19_v12 = vld [vmem:[%s1305_s0 + $0x8] sm:$0xff] }
   0x5   :  { %v27_v13 = vld [vmem:[%s1305_s0 + $0x48] sm:$0xff]  ;;  %v35_v14 = vunpack.c.l.s8.bf16 %v19_v12  ;;  %v357_v16 = vld [vmem:[%s1306_s1 + $0x10] sm:$0xff]  ;;  %v355_v17 = vld [vmem:[%s1306_s1] sm:$0xff]  ;;  %v37_v33 = vunpack.c.h.s8.bf16 %v19_v12 }
   0x6   :  { %v51_v15 = vunpack.c.l.s8.bf16 %v27_v13  ;;  %399 = vperm.xlu1 %897, %v357_v16   ;;  %389 = vperm.xlu0 %896, %v355_v17   ;;  %v909_v18 = vld [vmem:[%s1304_s2 + $0x10] sm:$0xff]   ;;  %v358_v19 = vld [vmem:[%s1306_s1 + $0x18] sm:$0xff]  ;;  %v356_v20 = vld [vmem:[%s1306_s1 + $0x8] sm:$0xff]  ;;  %v53_v34 = vunpack.c.h.s8.bf16 %v27_v13 }
   0x7   :  { %770 = vmatpush3.bf16.msra.mxu0 %v901_v4  ;;  %888 = vmatpush3.bf16.msra.mxu1 %v901_v4  ;;  %v910_v21 = vld [vmem:[%s1304_s2 + $0x48] sm:$0xff]   ;;  %v359_v24 = vld [vmem:[%s1306_s1 + $0x20] sm:$0xff]  ;;  %v362_v29 = vld [vmem:[%s1306_s1 + $0x38] sm:$0xff] }
   0x8   :  { %771 = vmatprep.subr.bf16.mxu0 %v902_v5  ;;  %881 = vmatprep.subr.bf16.mxu1 %v902_v5  ;;  %v911_v22 = vld [vmem:[%s1304_s2 + $0x8] sm:$0xff]   ;;  %v912_v25 = vld [vmem:[%s1304_s2 + $0x40] sm:$0xff]   ;;  %v361_v30 = vld [vmem:[%s1306_s1 + $0x30] sm:$0xff] }
   0x9   :  { %226 = vmatprep.mubr.bf16.mxu0 %v35_v14  ;;  %290 = vmatprep.mubr.bf16.mxu1 %v51_v15  ;;  %v360_v23 = vld [vmem:[%s1306_s1 + $0x28] sm:$0xff]  ;;  %v913_v26 = vld [vmem:[%s1304_s2] sm:$0xff]   ;;  %v21_v37 = vld [vmem:[%s1305_s0 + $0x18] sm:$0xff] }
   0xa   :  { %404 = vperm.xlu1 %897, %v358_v19   ;;  %394 = vperm.xlu0 %896, %v356_v20   ;;  %v18_v27 = vld [vmem:[%s1305_s0] sm:$0xff]  ;;  %v364_v35 = vld [vmem:[%s1306_s1 + $0x48] sm:$0xff]  ;;  %v29_v38 = vld [vmem:[%s1305_s0 + $0x58] sm:$0xff]  ;;  %v39_v43 = vunpack.c.l.s8.bf16 %v21_v37  ;;  %v41_v53 = vunpack.c.h.s8.bf16 %v21_v37 }
   0xb   :  { %772 = vmatpush3.bf16.msra.mxu0 %v903_v6  ;;  %889 = vmatpush3.bf16.msra.mxu1 %v903_v6  ;;  %v26_v28 = vld [vmem:[%s1305_s0 + $0x40] sm:$0xff]  ;;  %v34_v31 = vunpack.c.l.s8.bf16 %v18_v27  ;;  %v366_v39 = vld [vmem:[%s1306_s1 + $0x58] sm:$0xff]  ;;  %v365_v40 = vld [vmem:[%s1306_s1 + $0x50] sm:$0xff]  ;;  %v36_v41 = vunpack.c.h.s8.bf16 %v18_v27  ;;  %v55_v44 = vunpack.c.l.s8.bf16 %v29_v38  ;;  %v57_v54 = vunpack.c.h.s8.bf16 %v29_v38 }
   0xc   :  { %773 = vmatprep.subr.bf16.mxu0 %v904_v7  ;;  %882 = vmatprep.subr.bf16.mxu1 %v904_v7  ;;  %v50_v32 = vunpack.c.l.s8.bf16 %v26_v28  ;;  %v363_v36 = vld [vmem:[%s1306_s1 + $0x40] sm:$0xff]  ;;  %v52_v42 = vunpack.c.h.s8.bf16 %v26_v28  ;;  %v368_v45 = vld [vmem:[%s1306_s1 + $0x68] sm:$0xff]  ;;  %v20_v47 = vld [vmem:[%s1305_s0 + $0x10] sm:$0xff] }
   0xd   :  { %v367_v46 = vld [vmem:[%s1306_s1 + $0x60] sm:$0xff]  ;;  %v28_v48 = vld [vmem:[%s1305_s0 + $0x50] sm:$0xff]  ;;  %v370_v49 = vld [vmem:[%s1306_s1 + $0x78] sm:$0xff]  ;;  %v38_v51 = vunpack.c.l.s8.bf16 %v20_v47  ;;  %v40_v61 = vunpack.c.h.s8.bf16 %v20_v47 }
   0xe   :  { %414 = vperm.xlu1 %897, %v360_v23   ;;  %409 = vperm.xlu0 %896, %v359_v24   ;;  %v369_v50 = vld [vmem:[%s1306_s1 + $0x70] sm:$0xff]  ;;  %v54_v52 = vunpack.c.l.s8.bf16 %v28_v48  ;;  %v372_v55 = vld [vmem:[%s1306_s1 + $0x88] sm:$0xff]  ;;  %v371_v56 = vld [vmem:[%s1306_s1 + $0x80] sm:$0xff]  ;;  %v56_v62 = vunpack.c.h.s8.bf16 %v28_v48 }
   0xf   :  { %774 = vmatpush3.bf16.msra.mxu0 %v905_v8  ;;  %890 = vmatpush3.bf16.msra.mxu1 %v905_v8  ;;  %v23_v57 = vld [vmem:[%s1305_s0 + $0x28] sm:$0xff]  ;;  %v374_v59 = vld [vmem:[%s1306_s1 + $0x98] sm:$0xff]  ;;  %v373_v60 = vld [vmem:[%s1306_s1 + $0x90] sm:$0xff] }
  0x10   :  { %775 = vmatprep.subr.bf16.mxu0 %v906_v9  ;;  %883 = vmatprep.subr.bf16.mxu1 %v906_v9  ;;  %v31_v58 = vld [vmem:[%s1305_s0 + $0x68] sm:$0xff]  ;;  %v43_v63 = vunpack.c.l.s8.bf16 %v23_v57  ;;  %v375_v2 = vld [vmem:[%s1306_s1 + $0xa0] sm:$0xff]  ;;  %v378_v5 = vld [vmem:[%s1306_s1 + $0xb8] sm:$0xff]  ;;  %v45_v9 = vunpack.c.h.s8.bf16 %v23_v57 }
  0x11   :  { %v59_v0 = vunpack.c.l.s8.bf16 %v31_v58  ;;  %v376_v1 = vld [vmem:[%s1306_s1 + $0xa8] sm:$0xff]  ;;  %v22_v3 = vld [vmem:[%s1305_s0 + $0x20] sm:$0xff]  ;;  %v377_v6 = vld [vmem:[%s1306_s1 + $0xb0] sm:$0xff] }
  0x12   :  { %424 = vperm.xlu1 %897, %v362_v29   ;;  %419 = vperm.xlu0 %896, %v361_v30   ;;  %v30_v4 = vld [vmem:[%s1305_s0 + $0x60] sm:$0xff]  ;;  %v42_v7 = vunpack.c.l.s8.bf16 %v22_v3  ;;  %v25_v13 = vld [vmem:[%s1305_s0 + $0x38] sm:$0xff]  ;;  %v381_v16 = vld [vmem:[%s1306_s1 + $0xd0] sm:$0xff]  ;;  %v44_v17 = vunpack.c.h.s8.bf16 %v22_v3 }
  0x13   :  { %776 = vmatpush3.bf16.msra.mxu0 %v907_v10  ;;  %891 = vmatpush3.bf16.msra.mxu1 %v907_v10  ;;  %v58_v8 = vunpack.c.l.s8.bf16 %v30_v4  ;;  %v61_v10 = vunpack.c.h.s8.bf16 %v31_v58  ;;  %v379_v12 = vld [vmem:[%s1306_s1 + $0xc0] sm:$0xff]  ;;  %v33_v14 = vld [vmem:[%s1305_s0 + $0x78] sm:$0xff]  ;;  %v47_v19 = vunpack.c.l.s8.bf16 %v25_v13  ;;  %v24_v23 = vld [vmem:[%s1305_s0 + $0x30] sm:$0xff]  ;;  %v49_v29 = vunpack.c.h.s8.bf16 %v25_v13 }
  0x14   :  { %777 = vmatprep.subr.bf16.mxu0 %v908_v11  ;;  %884 = vmatprep.subr.bf16.mxu1 %v908_v11  ;;  %v380_v11 = vld [vmem:[%s1306_s1 + $0xc8] sm:$0xff]  ;;  %v382_v15 = vld [vmem:[%s1306_s1 + $0xd8] sm:$0xff]  ;;  %v63_v20 = vunpack.c.l.s8.bf16 %v33_v14  ;;  %v32_v24 = vld [vmem:[%s1305_s0 + $0x70] sm:$0xff]  ;;  %v46_v27 = vunpack.c.l.s8.bf16 %v24_v23  ;;  %v65_v30 = vunpack.c.h.s8.bf16 %v33_v14 }
  0x15   :  { %v62_v28 = vunpack.c.l.s8.bf16 %v32_v24 }
  0x16   :  { %434 = vperm.xlu1 %897, %v364_v35   ;;  %429 = vperm.xlu0 %896, %v363_v36  }
  0x17   :  { %778 = vmatpush3.bf16.msra.mxu0 %v909_v18  ;;  %892 = vmatpush3.bf16.msra.mxu1 %v909_v18  ;;  %v60_v18 = vunpack.c.h.s8.bf16 %v30_v4 }
  0x18   :  { %779 = vmatprep.subr.bf16.mxu0 %v910_v21  ;;  %885 = vmatprep.subr.bf16.mxu1 %v910_v21  ;;  %v384_v21 = vld [vmem:[%s1306_s1 + $0xe8] sm:$0xff] }
  0x1a   :  { %444 = vperm.xlu1 %897, %v366_v39   ;;  %439 = vperm.xlu0 %896, %v365_v40  }
  0x1b   :  { %780 = vmatpush3.bf16.msra.mxu0 %v911_v22  ;;  %893 = vmatpush3.bf16.msra.mxu1 %v911_v22  ;;  %v383_v22 = vld [vmem:[%s1306_s1 + $0xe0] sm:$0xff] }
  0x1c   :  { %781 = vmatprep.subr.bf16.mxu0 %v912_v25  ;;  %886 = vmatprep.subr.bf16.mxu1 %v912_v25  ;;  %v386_v25 = vld [vmem:[%s1306_s1 + $0xf8] sm:$0xff] }
  0x1e   :  { %454 = vperm.xlu1 %897, %v368_v45   ;;  %449 = vperm.xlu0 %896, %v367_v46  }
  0x1f   :  { %782 = vmatpush3.bf16.msra.mxu0 %v913_v26  ;;  %894 = vmatpush3.bf16.msra.mxu1 %v913_v26  ;;  %v385_v26 = vld [vmem:[%s1306_s1 + $0xf0] sm:$0xff] }
  0x22   :  { %227 = vmatmul.mubr.bf16.vlgmr.msra.gmra.mxu0 %v34_v31  ;;  %291 = vmatmul.mubr.bf16.vlgmr.msra.gmra.mxu1 %v50_v32  ;;  %v48_v31 = vunpack.c.h.s8.bf16 %v24_v23  ;;  %v64_v32 = vunpack.c.h.s8.bf16 %v32_v24 }
  0x23   :  { %234 = vmatprep.mubr.bf16.mxu0 %v37_v33  ;;  %298 = vmatprep.mubr.bf16.mxu1 %v53_v34 }
  0x24   :  { %464 = vperm.xlu1 %897, %v370_v49   ;;  %459 = vperm.xlu0 %896, %v369_v50  }
  0x28   :  { %474 = vperm.xlu1 %897, %v372_v55   ;;  %469 = vperm.xlu0 %896, %v371_v56   ;;  %v1161_v56 = vld [vmem:[%s1307_s3] ss:$0 sm:$0xff] }
  0x2a   :  { %235 = vmatmul.mubr.bf16.gmra.mxu0 %v36_v41  ;;  %299 = vmatmul.mubr.bf16.gmra.mxu1 %v52_v42 }
  0x2b   :  { %242 = vmatprep.mubr.bf16.mxu0 %v39_v43  ;;  %306 = vmatprep.mubr.bf16.mxu1 %v55_v44 }
  0x2c   :  { %484 = vperm.xlu1 %897, %v374_v59   ;;  %479 = vperm.xlu0 %896, %v373_v60  }
  0x30   :  { %494 = vperm.xlu1 %897, %v376_v1   ;;  %489 = vperm.xlu0 %896, %v375_v2  }
  0x32   :  { %243 = vmatmul.mubr.bf16.gmra.mxu0 %v38_v51  ;;  %307 = vmatmul.mubr.bf16.gmra.mxu1 %v54_v52 }
  0x33   :  { %250 = vmatprep.mubr.bf16.mxu0 %v41_v53  ;;  %314 = vmatprep.mubr.bf16.mxu1 %v57_v54 }
  0x34   :  { %504 = vperm.xlu1 %897, %v378_v5   ;;  %499 = vperm.xlu0 %896, %v377_v6  }
  0x38   :  { %514 = vperm.xlu1 %897, %v380_v11   ;;  %509 = vperm.xlu0 %896, %v379_v12  }
  0x3a   :  { %251 = vmatmul.mubr.bf16.gmra.mxu0 %v40_v61  ;;  %315 = vmatmul.mubr.bf16.gmra.mxu1 %v56_v62 }
  0x3b   :  { %258 = vmatprep.mubr.bf16.mxu0 %v43_v63  ;;  %322 = vmatprep.mubr.bf16.mxu1 %v59_v0 }
  0x3c   :  { %524 = vperm.xlu1 %897, %v382_v15   ;;  %519 = vperm.xlu0 %896, %v381_v16  }
  0x40   :  { %534 = vperm.xlu1 %897, %v384_v21   ;;  %529 = vperm.xlu0 %896, %v383_v22  }
  0x42   :  { %259 = vmatmul.mubr.bf16.gmra.mxu0 %v42_v7  ;;  %323 = vmatmul.mubr.bf16.gmra.mxu1 %v58_v8 }
  0x43   :  { %266 = vmatprep.mubr.bf16.mxu0 %v45_v9  ;;  %330 = vmatprep.mubr.bf16.mxu1 %v61_v10 }
  0x44   :  { %544 = vperm.xlu1 %897, %v386_v25   ;;  %539 = vperm.xlu0 %896, %v385_v26  }
  0x4a   :  { %267 = vmatmul.mubr.bf16.gmra.mxu0 %v44_v17  ;;  %331 = vmatmul.mubr.bf16.gmra.mxu1 %v60_v18 }
  0x4b   :  { %274 = vmatprep.mubr.bf16.mxu0 %v47_v19  ;;  %338 = vmatprep.mubr.bf16.mxu1 %v63_v20 }
  0x52   :  { %275 = vmatmul.mubr.bf16.gmra.mxu0 %v46_v27  ;;  %339 = vmatmul.mubr.bf16.gmra.mxu1 %v62_v28 }
  0x53   :  { %282 = vmatprep.mubr.bf16.mxu0 %v49_v29  ;;  %346 = vmatprep.mubr.bf16.mxu1 %v65_v30 }
  0x5a   :  { %283 = vmatmul.mubr.bf16.gmra.mxu0 %v48_v31  ;;  %347 = vmatmul.mubr.bf16.gmra.mxu1 %v64_v32 }
  0x81   :  { %v390_v33 = vpop.permute.xlu0 %389  ;;  %v400_v34 = vpop.permute.xlu1 %399 }
  0x85   :  { %v395_v35 = vpop.permute.xlu0 %394  ;;  %v1132_v36 = vpop.permute.xlu1 %404 }
  0x89   :  { %v1134_v37 = vpop.permute.xlu0 %409  ;;  %v1136_v38 = vpop.permute.xlu1 %414 }
  0x8d   :  { %v1138_v39 = vpop.permute.xlu0 %419  ;;  %v1140_v40 = vpop.permute.xlu1 %424 }
  0x91   :  { %v1142_v41 = vpop.permute.xlu0 %429  ;;  %v1144_v42 = vpop.permute.xlu1 %434 }
  0x95   :  { %v1146_v43 = vpop.permute.xlu0 %439  ;;  %v1148_v44 = vpop.permute.xlu1 %444 }
  0x99   :  { %v1150_v45 = vpop.permute.xlu0 %449  ;;  %v1152_v46 = vpop.permute.xlu1 %454 }
  0x9f   :  { %v1154_v47 = vpop.permute.xlu0 %459  ;;  %v1156_v52 = vpop.permute.xlu1 %464 }
  0xa3   :  { %v470_v53 = vpop.permute.xlu0 %469  ;;  %v475_v5 = vpop.permute.xlu1 %474 }
  0xa7   :  { %v480_v12 = vpop.permute.xlu0 %479 }
  0xe2   :  { %v783_v48 = vpop.f32.mrf.mxu0  ;;  %v831_v49 = vpop.f32.mrf.mxu1 }
  0xe4   :  { %v784_v50 = vpop.f32.mrf.mxu0  ;;  %v832_v51 = vpop.f32.mrf.mxu1 }
  0xe5   :  { %v785_v54 = vadd.f32 %v784_v50, %v783_v48  ;;  %v833_v55 = vadd.f32 %v832_v51, %v831_v49  ;;  %v485_v48 = vpop.permute.xlu1 %484 }
  0xe6   :  { %v786_v57 = vpop.f32.mrf.mxu0  ;;  %v834_v58 = vpop.f32.mrf.mxu1 }
  0xe7   :  { %v547_v59 = vmul.f32 %v785_v54, %v390_v33  ;;  %v563_v60 = vmul.f32 %v833_v55, %v470_v53  ;;  %v490_v55 = vpop.permute.xlu0 %489 }
  0xe8   :  { %v787_v61 = vpop.f32.mrf.mxu0  ;;  %v835_v62 = vpop.f32.mrf.mxu1 }
  0xe9   :  { %v586_v63 = vadd.f32 %v1161_v56, %v547_v59  ;;  %v602_v0 = vadd.f32 %v1161_v56, %v563_v60  ;;  %v788_v1 = vadd.f32 %v787_v61, %v786_v57  ;;  %v836_v2 = vadd.f32 %v835_v62, %v834_v58 }
  0xea   :  { %v789_v3 = vpop.f32.mrf.mxu0  ;;  %v837_v4 = vpop.f32.mrf.mxu1 }
  0xeb   :  { %vm618_vm0 = vcmp.gt.f32.partialorder %v586_v63, 0.0  ;;  %v650_v6 = vmul.f32 0.25, %v586_v63  ;;  %vm634_vm1 = vcmp.gt.f32.partialorder %v602_v0, 0.0  ;;  %v666_v7 = vmul.f32 0.25, %v602_v0 }
  0xec   :  { %v548_v8 = vmul.f32 %v788_v1, %v395_v35  ;;  %v564_v9 = vmul.f32 %v836_v2, %v475_v5  ;;  %v790_v10 = vpop.f32.mrf.mxu0  ;;  %v838_v11 = vpop.f32.mrf.mxu1 }
  0xed   :  { %v682_v13 = vsel %vm618_vm0, %v586_v63, %v650_v6  ;;  %v698_v14 = vsel %vm634_vm1, %v602_v0, %v666_v7  ;;  %v791_v15 = vadd.f32 %v790_v10, %v789_v3  ;;  %v839_v16 = vadd.f32 %v838_v11, %v837_v4 }
  0xee   :  { %714 = vst [vmem:[%s1308_s4] sm:$0xff] %v682_v13  ;;  %730 = vst [vmem:[%s1308_s4 + $0x80] sm:$0xff] %v698_v14  ;;  %v587_v17 = vadd.f32 %v1161_v56, %v548_v8  ;;  %v603_v18 = vadd.f32 %v1161_v56, %v564_v9  ;;  %v792_v19 = vpop.f32.mrf.mxu0  ;;  %v840_v20 = vpop.f32.mrf.mxu1 }
  0xef   :  { %v549_v21 = vmul.f32 %v791_v15, %v400_v34  ;;  %v565_v22 = vmul.f32 %v839_v16, %v480_v12  ;;  %v495_v14 = vpop.permute.xlu1 %494 }
  0xf0   :  { %vm619_vm2 = vcmp.gt.f32.partialorder %v587_v17, 0.0  ;;  %v651_v23 = vmul.f32 0.25, %v587_v17  ;;  %vm635_vm3 = vcmp.gt.f32.partialorder %v603_v18, 0.0  ;;  %v667_v24 = vmul.f32 0.25, %v603_v18  ;;  %v793_v25 = vpop.f32.mrf.mxu0  ;;  %v841_v26 = vpop.f32.mrf.mxu1 }
  0xf1   :  { %v588_v27 = vadd.f32 %v1161_v56, %v549_v21  ;;  %v604_v28 = vadd.f32 %v1161_v56, %v565_v22  ;;  %v794_v29 = vadd.f32 %v793_v25, %v792_v19  ;;  %v842_v30 = vadd.f32 %v841_v26, %v840_v20  ;;  %v500_v20 = vpop.permute.xlu0 %499 }
  0xf2   :  { %v683_v31 = vsel %vm619_vm2, %v587_v17, %v651_v23  ;;  %v699_v32 = vsel %vm635_vm3, %v603_v18, %v667_v24  ;;  %v795_v33 = vpop.f32.mrf.mxu0  ;;  %v843_v35 = vpop.f32.mrf.mxu1 }
  0xf3   :  { %715 = vst [vmem:[%s1308_s4 + $0x8] sm:$0xff] %v683_v31  ;;  %731 = vst [vmem:[%s1308_s4 + $0x88] sm:$0xff] %v699_v32  ;;  %vm620_vm4 = vcmp.gt.f32.partialorder %v588_v27, 0.0  ;;  %v652_v34 = vmul.f32 0.25, %v588_v27  ;;  %vm636_vm5 = vcmp.gt.f32.partialorder %v604_v28, 0.0  ;;  %v668_v49 = vmul.f32 0.25, %v604_v28 }
  0xf4   :  { %v550_v50 = vmul.f32 %v794_v29, %v1132_v36  ;;  %v566_v51 = vmul.f32 %v842_v30, %v485_v48  ;;  %v796_v53 = vpop.f32.mrf.mxu0  ;;  %v844_v54 = vpop.f32.mrf.mxu1 }
  0xf5   :  { %v684_v57 = vsel %vm620_vm4, %v588_v27, %v652_v34  ;;  %v700_v58 = vsel %vm636_vm5, %v604_v28, %v668_v49  ;;  %v797_v59 = vadd.f32 %v796_v53, %v795_v33  ;;  %v845_v60 = vadd.f32 %v844_v54, %v843_v35 }
  0xf6   :  { %716 = vst [vmem:[%s1308_s4 + $0x10] sm:$0xff] %v684_v57  ;;  %732 = vst [vmem:[%s1308_s4 + $0x90] sm:$0xff] %v700_v58  ;;  %v589_v61 = vadd.f32 %v1161_v56, %v550_v50  ;;  %v605_v36 = vadd.f32 %v1161_v56, %v566_v51  ;;  %v798_v62 = vpop.f32.mrf.mxu0  ;;  %v846_v63 = vpop.f32.mrf.mxu1 }
  0xf7   :  { %v551_v0 = vmul.f32 %v797_v59, %v1134_v37  ;;  %v567_v1 = vmul.f32 %v845_v60, %v490_v55  ;;  %v505_v55 = vpop.permute.xlu1 %504 }
  0xf8   :  { %vm621_vm6 = vcmp.gt.f32.partialorder %v589_v61, 0.0  ;;  %v653_v2 = vmul.f32 0.25, %v589_v61  ;;  %vm637_vm7 = vcmp.gt.f32.partialorder %v605_v36, 0.0  ;;  %v669_v3 = vmul.f32 0.25, %v605_v36  ;;  %v799_v4 = vpop.f32.mrf.mxu0  ;;  %v847_v5 = vpop.f32.mrf.mxu1 }
  0xf9   :  { %v590_v6 = vadd.f32 %v1161_v56, %v551_v0  ;;  %v606_v7 = vadd.f32 %v1161_v56, %v567_v1  ;;  %v800_v8 = vadd.f32 %v799_v4, %v798_v62  ;;  %v848_v9 = vadd.f32 %v847_v5, %v846_v63 }
  0xfa   :  { %v685_v10 = vsel %vm621_vm6, %v589_v61, %v653_v2  ;;  %v701_v11 = vsel %vm637_vm7, %v605_v36, %v669_v3  ;;  %v801_v12 = vpop.f32.mrf.mxu0  ;;  %v849_v13 = vpop.f32.mrf.mxu1 }
  0xfb   :  { %717 = vst [vmem:[%s1308_s4 + $0x18] sm:$0xff] %v685_v10  ;;  %733 = vst [vmem:[%s1308_s4 + $0x98] sm:$0xff] %v701_v11  ;;  %vm622_vm8 = vcmp.gt.f32.partialorder %v590_v6, 0.0  ;;  %v654_v37 = vmul.f32 0.25, %v590_v6  ;;  %vm638_vm9 = vcmp.gt.f32.partialorder %v606_v7, 0.0  ;;  %v670_v15 = vmul.f32 0.25, %v606_v7  ;;  %v510_v36 = vpop.permute.xlu0 %509 }
  0xfc   :  { %v552_v16 = vmul.f32 %v800_v8, %v1136_v38  ;;  %v568_v17 = vmul.f32 %v848_v9, %v495_v14  ;;  %v802_v18 = vpop.f32.mrf.mxu0  ;;  %v850_v19 = vpop.f32.mrf.mxu1 }
  0xfd   :  { %v686_v21 = vsel %vm622_vm8, %v590_v6, %v654_v37  ;;  %v702_v22 = vsel %vm638_vm9, %v606_v7, %v670_v15  ;;  %v803_v23 = vadd.f32 %v802_v18, %v801_v12  ;;  %v851_v24 = vadd.f32 %v850_v19, %v849_v13  ;;  %v515_v18 = vpop.permute.xlu1 %514 }
  0xfe   :  { %718 = vst [vmem:[%s1308_s4 + $0x20] sm:$0xff] %v686_v21  ;;  %734 = vst [vmem:[%s1308_s4 + $0xa0] sm:$0xff] %v702_v22  ;;  %v591_v25 = vadd.f32 %v1161_v56, %v552_v16  ;;  %v607_v38 = vadd.f32 %v1161_v56, %v568_v17  ;;  %v804_v26 = vpop.f32.mrf.mxu0  ;;  %v852_v27 = vpop.f32.mrf.mxu1 }
  0xff   :  { %v553_v28 = vmul.f32 %v803_v23, %v1138_v39  ;;  %v569_v29 = vmul.f32 %v851_v24, %v500_v20  ;;  %v520_v24 = vpop.permute.xlu0 %519 }
 0x100   :  { %vm623_vm10 = vcmp.gt.f32.partialorder %v591_v25, 0.0  ;;  %v655_v30 = vmul.f32 0.25, %v591_v25  ;;  %vm639_vm11 = vcmp.gt.f32.partialorder %v607_v38, 0.0  ;;  %v671_v31 = vmul.f32 0.25, %v607_v38  ;;  %v805_v32 = vpop.f32.mrf.mxu0  ;;  %v853_v33 = vpop.f32.mrf.mxu1 }
 0x101   :  { %v592_v35 = vadd.f32 %v1161_v56, %v553_v28  ;;  %v608_v48 = vadd.f32 %v1161_v56, %v569_v29  ;;  %v806_v34 = vadd.f32 %v805_v32, %v804_v26  ;;  %v854_v49 = vadd.f32 %v853_v33, %v852_v27 }
 0x102   :  { %v687_v50 = vsel %vm623_vm10, %v591_v25, %v655_v30  ;;  %v703_v51 = vsel %vm639_vm11, %v607_v38, %v671_v31  ;;  %v807_v53 = vpop.f32.mrf.mxu0  ;;  %v855_v54 = vpop.f32.mrf.mxu1 }
 0x103   :  { %719 = vst [vmem:[%s1308_s4 + $0x28] sm:$0xff] %v687_v50  ;;  %735 = vst [vmem:[%s1308_s4 + $0xa8] sm:$0xff] %v703_v51  ;;  %vm624_vm12 = vcmp.gt.f32.partialorder %v592_v35, 0.0  ;;  %v656_v39 = vmul.f32 0.25, %v592_v35  ;;  %vm640_vm13 = vcmp.gt.f32.partialorder %v608_v48, 0.0  ;;  %v672_v57 = vmul.f32 0.25, %v608_v48 }
 0x104   :  { %v554_v58 = vmul.f32 %v806_v34, %v1140_v40  ;;  %v570_v59 = vmul.f32 %v854_v49, %v505_v55  ;;  %v808_v60 = vpop.f32.mrf.mxu0  ;;  %v856_v61 = vpop.f32.mrf.mxu1 }
 0x105   :  { %v688_v62 = vsel %vm624_vm12, %v592_v35, %v656_v39  ;;  %v704_v63 = vsel %vm640_vm13, %v608_v48, %v672_v57  ;;  %v809_v0 = vadd.f32 %v808_v60, %v807_v53  ;;  %v857_v1 = vadd.f32 %v856_v61, %v855_v54 }
 0x106   :  { %720 = vst [vmem:[%s1308_s4 + $0x30] sm:$0xff] %v688_v62  ;;  %736 = vst [vmem:[%s1308_s4 + $0xb0] sm:$0xff] %v704_v63  ;;  %v593_v2 = vadd.f32 %v1161_v56, %v554_v58  ;;  %v609_v40 = vadd.f32 %v1161_v56, %v570_v59  ;;  %v810_v3 = vpop.f32.mrf.mxu0  ;;  %v858_v4 = vpop.f32.mrf.mxu1 }
 0x107   :  { %v555_v5 = vmul.f32 %v809_v0, %v1142_v41  ;;  %v571_v6 = vmul.f32 %v857_v1, %v510_v36  ;;  %v525_v58 = vpop.permute.xlu1 %524  ;;  %v530_v63 = vpop.permute.xlu0 %529 }
 0x108   :  { %vm625_vm14 = vcmp.gt.f32.partialorder %v593_v2, 0.0  ;;  %v657_v7 = vmul.f32 0.25, %v593_v2  ;;  %vm641_vm15 = vcmp.gt.f32.partialorder %v609_v40, 0.0  ;;  %v673_v8 = vmul.f32 0.25, %v609_v40  ;;  %v811_v9 = vpop.f32.mrf.mxu0  ;;  %v859_v10 = vpop.f32.mrf.mxu1 }
 0x109   :  { %v594_v11 = vadd.f32 %v1161_v56, %v555_v5  ;;  %v610_v12 = vadd.f32 %v1161_v56, %v571_v6  ;;  %v812_v13 = vadd.f32 %v811_v9, %v810_v3  ;;  %v860_v14 = vadd.f32 %v859_v10, %v858_v4 }
 0x10a   :  { %v689_v37 = vsel %vm625_vm14, %v593_v2, %v657_v7  ;;  %v705_v15 = vsel %vm641_vm15, %v609_v40, %v673_v8  ;;  %v813_v16 = vpop.f32.mrf.mxu0  ;;  %v861_v17 = vpop.f32.mrf.mxu1 }
 0x10b   :  { %721 = vst [vmem:[%s1308_s4 + $0x38] sm:$0xff] %v689_v37  ;;  %737 = vst [vmem:[%s1308_s4 + $0xb8] sm:$0xff] %v705_v15  ;;  %vm626_vm0 = vcmp.gt.f32.partialorder %v594_v11, 0.0  ;;  %v658_v41 = vmul.f32 0.25, %v594_v11  ;;  %vm642_vm1 = vcmp.gt.f32.partialorder %v610_v12, 0.0  ;;  %v674_v19 = vmul.f32 0.25, %v610_v12 }
 0x10c   :  { %v556_v20 = vmul.f32 %v812_v13, %v1144_v42  ;;  %v572_v21 = vmul.f32 %v860_v14, %v515_v18  ;;  %v814_v22 = vpop.f32.mrf.mxu0  ;;  %v862_v23 = vpop.f32.mrf.mxu1 }
 0x10d   :  { %v690_v25 = vsel %vm626_vm0, %v594_v11, %v658_v41  ;;  %v706_v38 = vsel %vm642_vm1, %v610_v12, %v674_v19  ;;  %v815_v26 = vadd.f32 %v814_v22, %v813_v16  ;;  %v863_v27 = vadd.f32 %v862_v23, %v861_v17  ;;  %v535_v41 = vpop.permute.xlu1 %534 }
 0x10e   :  { %722 = vst [vmem:[%s1308_s4 + $0x40] sm:$0xff] %v690_v25  ;;  %738 = vst [vmem:[%s1308_s4 + $0xc0] sm:$0xff] %v706_v38  ;;  %v595_v28 = vadd.f32 %v1161_v56, %v556_v20  ;;  %v611_v42 = vadd.f32 %v1161_v56, %v572_v21  ;;  %v816_v29 = vpop.f32.mrf.mxu0  ;;  %v864_v30 = vpop.f32.mrf.mxu1 }
 0x10f   :  { %v557_v31 = vmul.f32 %v815_v26, %v1146_v43  ;;  %v573_v32 = vmul.f32 %v863_v27, %v520_v24  ;;  %v540_v24 = vpop.permute.xlu0 %539 }
 0x110   :  { %vm627_vm2 = vcmp.gt.f32.partialorder %v595_v28, 0.0  ;;  %v659_v33 = vmul.f32 0.25, %v595_v28  ;;  %vm643_vm3 = vcmp.gt.f32.partialorder %v611_v42, 0.0  ;;  %v675_v35 = vmul.f32 0.25, %v611_v42  ;;  %v817_v48 = vpop.f32.mrf.mxu0  ;;  %v865_v34 = vpop.f32.mrf.mxu1 }
 0x111   :  { %v596_v49 = vadd.f32 %v1161_v56, %v557_v31  ;;  %v612_v50 = vadd.f32 %v1161_v56, %v573_v32  ;;  %v818_v51 = vadd.f32 %v817_v48, %v816_v29  ;;  %v866_v53 = vadd.f32 %v865_v34, %v864_v30 }
 0x112   :  { %v691_v54 = vsel %vm627_vm2, %v595_v28, %v659_v33  ;;  %v707_v55 = vsel %vm643_vm3, %v611_v42, %v675_v35  ;;  %v819_v39 = vpop.f32.mrf.mxu0  ;;  %v867_v57 = vpop.f32.mrf.mxu1 }
 0x113   :  { %723 = vst [vmem:[%s1308_s4 + $0x48] sm:$0xff] %v691_v54  ;;  %739 = vst [vmem:[%s1308_s4 + $0xc8] sm:$0xff] %v707_v55  ;;  %vm628_vm4 = vcmp.gt.f32.partialorder %v596_v49, 0.0  ;;  %v660_v43 = vmul.f32 0.25, %v596_v49  ;;  %vm644_vm5 = vcmp.gt.f32.partialorder %v612_v50, 0.0  ;;  %v676_v59 = vmul.f32 0.25, %v612_v50  ;;  %v545_v55 = vpop.permute.xlu1 %544 }
 0x114   :  { %v558_v60 = vmul.f32 %v818_v51, %v1148_v44  ;;  %v574_v61 = vmul.f32 %v866_v53, %v525_v58  ;;  %v820_v36 = vpop.f32.mrf.mxu0  ;;  %v868_v62 = vpop.f32.mrf.mxu1 }
 0x115   :  { %v692_v0 = vsel %vm628_vm4, %v596_v49, %v660_v43  ;;  %v708_v1 = vsel %vm644_vm5, %v612_v50, %v676_v59  ;;  %v821_v2 = vadd.f32 %v820_v36, %v819_v39  ;;  %v869_v40 = vadd.f32 %v868_v62, %v867_v57 }
 0x116   :  { %724 = vst [vmem:[%s1308_s4 + $0x50] sm:$0xff] %v692_v0  ;;  %740 = vst [vmem:[%s1308_s4 + $0xd0] sm:$0xff] %v708_v1  ;;  %v597_v3 = vadd.f32 %v1161_v56, %v558_v60  ;;  %v613_v44 = vadd.f32 %v1161_v56, %v574_v61  ;;  %v822_v4 = vpop.f32.mrf.mxu0  ;;  %v870_v5 = vpop.f32.mrf.mxu1 }
 0x117   :  { %v559_v6 = vmul.f32 %v821_v2, %v1150_v45  ;;  %v575_v7 = vmul.f32 %v869_v40, %v530_v63 }
 0x118   :  { %vm629_vm6 = vcmp.gt.f32.partialorder %v597_v3, 0.0  ;;  %v661_v8 = vmul.f32 0.25, %v597_v3  ;;  %vm645_vm7 = vcmp.gt.f32.partialorder %v613_v44, 0.0  ;;  %v677_v9 = vmul.f32 0.25, %v613_v44  ;;  %v823_v10 = vpop.f32.mrf.mxu0  ;;  %v871_v11 = vpop.f32.mrf.mxu1 }
 0x119   :  { %v598_v12 = vadd.f32 %v1161_v56, %v559_v6  ;;  %v614_v13 = vadd.f32 %v1161_v56, %v575_v7  ;;  %v824_v14 = vadd.f32 %v823_v10, %v822_v4  ;;  %v872_v37 = vadd.f32 %v871_v11, %v870_v5 }
 0x11a   :  { %v693_v15 = vsel %vm629_vm6, %v597_v3, %v661_v8  ;;  %v709_v16 = vsel %vm645_vm7, %v613_v44, %v677_v9  ;;  %v825_v17 = vpop.f32.mrf.mxu0  ;;  %v873_v18 = vpop.f32.mrf.mxu1 }
 0x11b   :  { %725 = vst [vmem:[%s1308_s4 + $0x58] sm:$0xff] %v693_v15  ;;  %741 = vst [vmem:[%s1308_s4 + $0xd8] sm:$0xff] %v709_v16  ;;  %vm630_vm8 = vcmp.gt.f32.partialorder %v598_v12, 0.0  ;;  %v662_v45 = vmul.f32 0.25, %v598_v12  ;;  %vm646_vm9 = vcmp.gt.f32.partialorder %v614_v13, 0.0  ;;  %v678_v19 = vmul.f32 0.25, %v614_v13 }
 0x11c   :  { %v560_v20 = vmul.f32 %v824_v14, %v1152_v46  ;;  %v576_v21 = vmul.f32 %v872_v37, %v535_v41  ;;  %v826_v22 = vpop.f32.mrf.mxu0  ;;  %v874_v23 = vpop.f32.mrf.mxu1 }
 0x11d   :  { %v694_v25 = vsel %vm630_vm8, %v598_v12, %v662_v45  ;;  %v710_v38 = vsel %vm646_vm9, %v614_v13, %v678_v19  ;;  %v827_v26 = vadd.f32 %v826_v22, %v825_v17  ;;  %v875_v27 = vadd.f32 %v874_v23, %v873_v18 }
 0x11e   :  { %726 = vst [vmem:[%s1308_s4 + $0x60] sm:$0xff] %v694_v25  ;;  %742 = vst [vmem:[%s1308_s4 + $0xe0] sm:$0xff] %v710_v38  ;;  %v599_v28 = vadd.f32 %v1161_v56, %v560_v20  ;;  %v615_v46 = vadd.f32 %v1161_v56, %v576_v21  ;;  %v828_v42 = vpop.f32.mrf.mxu0  ;;  %v876_v29 = vpop.f32.mrf.mxu1 }
 0x11f   :  { %v561_v30 = vmul.f32 %v827_v26, %v1154_v47  ;;  %v577_v31 = vmul.f32 %v875_v27, %v540_v24 }
 0x120   :  { %vm631_vm10 = vcmp.gt.f32.partialorder %v599_v28, 0.0  ;;  %v663_v32 = vmul.f32 0.25, %v599_v28  ;;  %vm647_vm11 = vcmp.gt.f32.partialorder %v615_v46, 0.0  ;;  %v679_v33 = vmul.f32 0.25, %v615_v46  ;;  %v829_v35 = vpop.f32.mrf.mxu0  ;;  %v877_v48 = vpop.f32.mrf.mxu1 }
 0x121   :  { %v600_v34 = vadd.f32 %v1161_v56, %v561_v30  ;;  %v616_v49 = vadd.f32 %v1161_v56, %v577_v31  ;;  %v830_v50 = vadd.f32 %v829_v35, %v828_v42  ;;  %v878_v51 = vadd.f32 %v877_v48, %v876_v29 }
 0x122   :  { %v695_v53 = vsel %vm631_vm10, %v599_v28, %v663_v32  ;;  %v711_v54 = vsel %vm647_vm11, %v615_v46, %v679_v33 }
 0x123   :  { %727 = vst [vmem:[%s1308_s4 + $0x68] sm:$0xff] %v695_v53  ;;  %743 = vst [vmem:[%s1308_s4 + $0xe8] sm:$0xff] %v711_v54  ;;  %vm632_vm12 = vcmp.gt.f32.partialorder %v600_v34, 0.0  ;;  %v664_v47 = vmul.f32 0.25, %v600_v34  ;;  %vm648_vm13 = vcmp.gt.f32.partialorder %v616_v49, 0.0  ;;  %v680_v39 = vmul.f32 0.25, %v616_v49 }
 0x124   :  { %v562_v57 = vmul.f32 %v830_v50, %v1156_v52  ;;  %v578_v58 = vmul.f32 %v878_v51, %v545_v55 }
 0x125   :  { %v696_v43 = vsel %vm632_vm12, %v600_v34, %v664_v47  ;;  %v712_v59 = vsel %vm648_vm13, %v616_v49, %v680_v39 }
 0x126   :  { %728 = vst [vmem:[%s1308_s4 + $0x70] sm:$0xff] %v696_v43  ;;  %744 = vst [vmem:[%s1308_s4 + $0xf0] sm:$0xff] %v712_v59  ;;  %v601_v60 = vadd.f32 %v1161_v56, %v562_v57  ;;  %v617_v61 = vadd.f32 %v1161_v56, %v578_v58 }
 0x128   :  { %vm633_vm14 = vcmp.gt.f32.partialorder %v601_v60, 0.0  ;;  %v665_v36 = vmul.f32 0.25, %v601_v60  ;;  %vm649_vm15 = vcmp.gt.f32.partialorder %v617_v61, 0.0  ;;  %v681_v62 = vmul.f32 0.25, %v617_v61 }
 0x12a   :  { %v697_v52 = vsel %vm633_vm14, %v601_v60, %v665_v36  ;;  %v713_v63 = vsel %vm649_vm15, %v617_v61, %v681_v62 }
 0x12b   :  { %729 = vst [vmem:[%s1308_s4 + $0x78] sm:$0xff] %v697_v52  ;;  %745 = vst [vmem:[%s1308_s4 + $0xf8] sm:$0xff] %v713_v63 }

// kernel: graph_gcn_forward.2
= control target key start
LH: loop header
LB: loop body
LE: loop exit
PB: predicated region body
PF: predicated region fallthrough
CT: control target
= control target key end

     0   :  { %v1201_v1 = vmov 0   ;;  %s1543_s2 = inlined_call_operand.vmem [shape: bf16[256,128], index: 2, kind: input, shape index: {}]   ;;  %s1544_s0 = inlined_call_operand.vmem [shape: s8[256,256], index: 0, kind: input, shape index: {}]   ;;  %s1545_s1 = inlined_call_operand.vmem [shape: f32[256,1], index: 1, kind: input, shape index: {}]   ;;  %s1546_s3 = inlined_call_operand.vmem [shape: f32[1,128], index: 3, kind: input, shape index: {}]   ;;  %s1547_s4 = inlined_call_operand.vmem [shape: bf16[256,128], index: 4, kind: output, shape index: {}]  }
   0x1   :  { %v1185_v0 = vld [vmem:[%s1543_s2 + $0x78] sm:$0xff]   ;;  %1184 = vset.pattern.permute.xlu1 %v1201_v1  ;;  %1183 = vset.pattern.permute.xlu0 %v1201_v1  ;;  %v1187_v3 = vld [vmem:[%s1543_s2 + $0x70] sm:$0xff]   ;;  %v1189_v5 = vld [vmem:[%s1543_s2 + $0x68] sm:$0xff]  }
   0x2   :  { %v1186_v2 = vld [vmem:[%s1543_s2 + $0x38] sm:$0xff]   ;;  %1054 = vmatprep.subr.bf16.mxu0 %v1185_v0  ;;  %1166 = vmatprep.subr.bf16.mxu1 %v1185_v0  ;;  %v1188_v4 = vld [vmem:[%s1543_s2 + $0x30] sm:$0xff]   ;;  %v1190_v6 = vld [vmem:[%s1543_s2 + $0x28] sm:$0xff]  }
   0x3   :  { %1055 = vmatpush3.bf16.msra.mxu0 %v1186_v2  ;;  %1174 = vmatpush3.bf16.msra.mxu1 %v1186_v2  ;;  %v1191_v7 = vld [vmem:[%s1543_s2 + $0x60] sm:$0xff]   ;;  %v1193_v9 = vld [vmem:[%s1543_s2 + $0x58] sm:$0xff]   ;;  %v1195_v11 = vld [vmem:[%s1543_s2 + $0x50] sm:$0xff]  }
   0x4   :  { %1056 = vmatprep.subr.bf16.mxu0 %v1187_v3  ;;  %1167 = vmatprep.subr.bf16.mxu1 %v1187_v3  ;;  %v1192_v8 = vld [vmem:[%s1543_s2 + $0x20] sm:$0xff]   ;;  %v1194_v10 = vld [vmem:[%s1543_s2 + $0x18] sm:$0xff]   ;;  %v19_v12 = vld [vmem:[%s1544_s0 + $0x8] sm:$0xff] }
   0x5   :  { %v27_v13 = vld [vmem:[%s1544_s0 + $0x48] sm:$0xff]  ;;  %v35_v14 = vunpack.c.l.s8.bf16 %v19_v12  ;;  %v357_v16 = vld [vmem:[%s1545_s1 + $0x10] sm:$0xff]  ;;  %v355_v17 = vld [vmem:[%s1545_s1] sm:$0xff]  ;;  %v37_v33 = vunpack.c.h.s8.bf16 %v19_v12 }
   0x6   :  { %v51_v15 = vunpack.c.l.s8.bf16 %v27_v13  ;;  %399 = vperm.xlu1 %1184, %v357_v16   ;;  %389 = vperm.xlu0 %1183, %v355_v17   ;;  %v1196_v18 = vld [vmem:[%s1543_s2 + $0x10] sm:$0xff]   ;;  %v358_v19 = vld [vmem:[%s1545_s1 + $0x18] sm:$0xff]  ;;  %v356_v20 = vld [vmem:[%s1545_s1 + $0x8] sm:$0xff]  ;;  %v53_v34 = vunpack.c.h.s8.bf16 %v27_v13 }
   0x7   :  { %1057 = vmatpush3.bf16.msra.mxu0 %v1188_v4  ;;  %1175 = vmatpush3.bf16.msra.mxu1 %v1188_v4  ;;  %v1197_v21 = vld [vmem:[%s1543_s2 + $0x48] sm:$0xff]   ;;  %v359_v24 = vld [vmem:[%s1545_s1 + $0x20] sm:$0xff]  ;;  %v362_v29 = vld [vmem:[%s1545_s1 + $0x38] sm:$0xff] }
   0x8   :  { %1058 = vmatprep.subr.bf16.mxu0 %v1189_v5  ;;  %1168 = vmatprep.subr.bf16.mxu1 %v1189_v5  ;;  %v1198_v22 = vld [vmem:[%s1543_s2 + $0x8] sm:$0xff]   ;;  %v1199_v25 = vld [vmem:[%s1543_s2 + $0x40] sm:$0xff]   ;;  %v361_v30 = vld [vmem:[%s1545_s1 + $0x30] sm:$0xff] }
   0x9   :  { %226 = vmatprep.mubr.bf16.mxu0 %v35_v14  ;;  %290 = vmatprep.mubr.bf16.mxu1 %v51_v15  ;;  %v360_v23 = vld [vmem:[%s1545_s1 + $0x28] sm:$0xff]  ;;  %v1200_v26 = vld [vmem:[%s1543_s2] sm:$0xff]   ;;  %v21_v37 = vld [vmem:[%s1544_s0 + $0x18] sm:$0xff] }
   0xa   :  { %404 = vperm.xlu1 %1184, %v358_v19   ;;  %394 = vperm.xlu0 %1183, %v356_v20   ;;  %v18_v27 = vld [vmem:[%s1544_s0] sm:$0xff]  ;;  %v364_v35 = vld [vmem:[%s1545_s1 + $0x48] sm:$0xff]  ;;  %v29_v38 = vld [vmem:[%s1544_s0 + $0x58] sm:$0xff]  ;;  %v39_v43 = vunpack.c.l.s8.bf16 %v21_v37  ;;  %v41_v53 = vunpack.c.h.s8.bf16 %v21_v37 }
   0xb   :  { %1059 = vmatpush3.bf16.msra.mxu0 %v1190_v6  ;;  %1176 = vmatpush3.bf16.msra.mxu1 %v1190_v6  ;;  %v26_v28 = vld [vmem:[%s1544_s0 + $0x40] sm:$0xff]  ;;  %v34_v31 = vunpack.c.l.s8.bf16 %v18_v27  ;;  %v366_v39 = vld [vmem:[%s1545_s1 + $0x58] sm:$0xff]  ;;  %v365_v40 = vld [vmem:[%s1545_s1 + $0x50] sm:$0xff]  ;;  %v36_v41 = vunpack.c.h.s8.bf16 %v18_v27  ;;  %v55_v44 = vunpack.c.l.s8.bf16 %v29_v38  ;;  %v57_v54 = vunpack.c.h.s8.bf16 %v29_v38 }
   0xc   :  { %1060 = vmatprep.subr.bf16.mxu0 %v1191_v7  ;;  %1169 = vmatprep.subr.bf16.mxu1 %v1191_v7  ;;  %v50_v32 = vunpack.c.l.s8.bf16 %v26_v28  ;;  %v363_v36 = vld [vmem:[%s1545_s1 + $0x40] sm:$0xff]  ;;  %v52_v42 = vunpack.c.h.s8.bf16 %v26_v28  ;;  %v368_v45 = vld [vmem:[%s1545_s1 + $0x68] sm:$0xff]  ;;  %v20_v47 = vld [vmem:[%s1544_s0 + $0x10] sm:$0xff] }
   0xd   :  { %v367_v46 = vld [vmem:[%s1545_s1 + $0x60] sm:$0xff]  ;;  %v28_v48 = vld [vmem:[%s1544_s0 + $0x50] sm:$0xff]  ;;  %v370_v49 = vld [vmem:[%s1545_s1 + $0x78] sm:$0xff]  ;;  %v38_v51 = vunpack.c.l.s8.bf16 %v20_v47  ;;  %v40_v61 = vunpack.c.h.s8.bf16 %v20_v47 }
   0xe   :  { %414 = vperm.xlu1 %1184, %v360_v23   ;;  %409 = vperm.xlu0 %1183, %v359_v24   ;;  %v369_v50 = vld [vmem:[%s1545_s1 + $0x70] sm:$0xff]  ;;  %v54_v52 = vunpack.c.l.s8.bf16 %v28_v48  ;;  %v372_v55 = vld [vmem:[%s1545_s1 + $0x88] sm:$0xff]  ;;  %v371_v56 = vld [vmem:[%s1545_s1 + $0x80] sm:$0xff]  ;;  %v56_v62 = vunpack.c.h.s8.bf16 %v28_v48 }
   0xf   :  { %1061 = vmatpush3.bf16.msra.mxu0 %v1192_v8  ;;  %1177 = vmatpush3.bf16.msra.mxu1 %v1192_v8  ;;  %v23_v57 = vld [vmem:[%s1544_s0 + $0x28] sm:$0xff]  ;;  %v374_v59 = vld [vmem:[%s1545_s1 + $0x98] sm:$0xff]  ;;  %v373_v60 = vld [vmem:[%s1545_s1 + $0x90] sm:$0xff] }
  0x10   :  { %1062 = vmatprep.subr.bf16.mxu0 %v1193_v9  ;;  %1170 = vmatprep.subr.bf16.mxu1 %v1193_v9  ;;  %v31_v58 = vld [vmem:[%s1544_s0 + $0x68] sm:$0xff]  ;;  %v43_v63 = vunpack.c.l.s8.bf16 %v23_v57  ;;  %v375_v2 = vld [vmem:[%s1545_s1 + $0xa0] sm:$0xff]  ;;  %v378_v5 = vld [vmem:[%s1545_s1 + $0xb8] sm:$0xff]  ;;  %v45_v9 = vunpack.c.h.s8.bf16 %v23_v57 }
  0x11   :  { %v59_v0 = vunpack.c.l.s8.bf16 %v31_v58  ;;  %v376_v1 = vld [vmem:[%s1545_s1 + $0xa8] sm:$0xff]  ;;  %v22_v3 = vld [vmem:[%s1544_s0 + $0x20] sm:$0xff]  ;;  %v377_v6 = vld [vmem:[%s1545_s1 + $0xb0] sm:$0xff] }
  0x12   :  { %424 = vperm.xlu1 %1184, %v362_v29   ;;  %419 = vperm.xlu0 %1183, %v361_v30   ;;  %v30_v4 = vld [vmem:[%s1544_s0 + $0x60] sm:$0xff]  ;;  %v42_v7 = vunpack.c.l.s8.bf16 %v22_v3  ;;  %v25_v13 = vld [vmem:[%s1544_s0 + $0x38] sm:$0xff]  ;;  %v381_v16 = vld [vmem:[%s1545_s1 + $0xd0] sm:$0xff]  ;;  %v44_v17 = vunpack.c.h.s8.bf16 %v22_v3 }
  0x13   :  { %1063 = vmatpush3.bf16.msra.mxu0 %v1194_v10  ;;  %1178 = vmatpush3.bf16.msra.mxu1 %v1194_v10  ;;  %v58_v8 = vunpack.c.l.s8.bf16 %v30_v4  ;;  %v61_v10 = vunpack.c.h.s8.bf16 %v31_v58  ;;  %v379_v12 = vld [vmem:[%s1545_s1 + $0xc0] sm:$0xff]  ;;  %v33_v14 = vld [vmem:[%s1544_s0 + $0x78] sm:$0xff]  ;;  %v47_v19 = vunpack.c.l.s8.bf16 %v25_v13  ;;  %v24_v23 = vld [vmem:[%s1544_s0 + $0x30] sm:$0xff]  ;;  %v49_v29 = vunpack.c.h.s8.bf16 %v25_v13 }
  0x14   :  { %1064 = vmatprep.subr.bf16.mxu0 %v1195_v11  ;;  %1171 = vmatprep.subr.bf16.mxu1 %v1195_v11  ;;  %v380_v11 = vld [vmem:[%s1545_s1 + $0xc8] sm:$0xff]  ;;  %v382_v15 = vld [vmem:[%s1545_s1 + $0xd8] sm:$0xff]  ;;  %v63_v20 = vunpack.c.l.s8.bf16 %v33_v14  ;;  %v32_v24 = vld [vmem:[%s1544_s0 + $0x70] sm:$0xff]  ;;  %v46_v27 = vunpack.c.l.s8.bf16 %v24_v23  ;;  %v65_v30 = vunpack.c.h.s8.bf16 %v33_v14 }
  0x15   :  { %v62_v28 = vunpack.c.l.s8.bf16 %v32_v24 }
  0x16   :  { %434 = vperm.xlu1 %1184, %v364_v35   ;;  %429 = vperm.xlu0 %1183, %v363_v36  }
  0x17   :  { %1065 = vmatpush3.bf16.msra.mxu0 %v1196_v18  ;;  %1179 = vmatpush3.bf16.msra.mxu1 %v1196_v18  ;;  %v60_v18 = vunpack.c.h.s8.bf16 %v30_v4 }
  0x18   :  { %1066 = vmatprep.subr.bf16.mxu0 %v1197_v21  ;;  %1172 = vmatprep.subr.bf16.mxu1 %v1197_v21  ;;  %v384_v21 = vld [vmem:[%s1545_s1 + $0xe8] sm:$0xff] }
  0x1a   :  { %444 = vperm.xlu1 %1184, %v366_v39   ;;  %439 = vperm.xlu0 %1183, %v365_v40  }
  0x1b   :  { %1067 = vmatpush3.bf16.msra.mxu0 %v1198_v22  ;;  %1180 = vmatpush3.bf16.msra.mxu1 %v1198_v22  ;;  %v383_v22 = vld [vmem:[%s1545_s1 + $0xe0] sm:$0xff] }
  0x1c   :  { %1068 = vmatprep.subr.bf16.mxu0 %v1199_v25  ;;  %1173 = vmatprep.subr.bf16.mxu1 %v1199_v25  ;;  %v386_v25 = vld [vmem:[%s1545_s1 + $0xf8] sm:$0xff] }
  0x1e   :  { %454 = vperm.xlu1 %1184, %v368_v45   ;;  %449 = vperm.xlu0 %1183, %v367_v46  }
  0x1f   :  { %1069 = vmatpush3.bf16.msra.mxu0 %v1200_v26  ;;  %1181 = vmatpush3.bf16.msra.mxu1 %v1200_v26  ;;  %v385_v26 = vld [vmem:[%s1545_s1 + $0xf0] sm:$0xff] }
  0x22   :  { %227 = vmatmul.mubr.bf16.vlgmr.msra.gmra.mxu0 %v34_v31  ;;  %291 = vmatmul.mubr.bf16.vlgmr.msra.gmra.mxu1 %v50_v32  ;;  %v48_v31 = vunpack.c.h.s8.bf16 %v24_v23  ;;  %v64_v32 = vunpack.c.h.s8.bf16 %v32_v24 }
  0x23   :  { %234 = vmatprep.mubr.bf16.mxu0 %v37_v33  ;;  %298 = vmatprep.mubr.bf16.mxu1 %v53_v34 }
  0x24   :  { %464 = vperm.xlu1 %1184, %v370_v49   ;;  %459 = vperm.xlu0 %1183, %v369_v50  }
  0x28   :  { %474 = vperm.xlu1 %1184, %v372_v55   ;;  %469 = vperm.xlu0 %1183, %v371_v56   ;;  %v1448_v56 = vld [vmem:[%s1546_s3] ss:$0 sm:$0xff] }
  0x2a   :  { %235 = vmatmul.mubr.bf16.gmra.mxu0 %v36_v41  ;;  %299 = vmatmul.mubr.bf16.gmra.mxu1 %v52_v42 }
  0x2b   :  { %242 = vmatprep.mubr.bf16.mxu0 %v39_v43  ;;  %306 = vmatprep.mubr.bf16.mxu1 %v55_v44 }
  0x2c   :  { %484 = vperm.xlu1 %1184, %v374_v59   ;;  %479 = vperm.xlu0 %1183, %v373_v60  }
  0x30   :  { %494 = vperm.xlu1 %1184, %v376_v1   ;;  %489 = vperm.xlu0 %1183, %v375_v2  }
  0x32   :  { %243 = vmatmul.mubr.bf16.gmra.mxu0 %v38_v51  ;;  %307 = vmatmul.mubr.bf16.gmra.mxu1 %v54_v52 }
  0x33   :  { %250 = vmatprep.mubr.bf16.mxu0 %v41_v53  ;;  %314 = vmatprep.mubr.bf16.mxu1 %v57_v54 }
  0x34   :  { %504 = vperm.xlu1 %1184, %v378_v5   ;;  %499 = vperm.xlu0 %1183, %v377_v6  }
  0x38   :  { %514 = vperm.xlu1 %1184, %v380_v11   ;;  %509 = vperm.xlu0 %1183, %v379_v12  }
  0x3a   :  { %251 = vmatmul.mubr.bf16.gmra.mxu0 %v40_v61  ;;  %315 = vmatmul.mubr.bf16.gmra.mxu1 %v56_v62 }
  0x3b   :  { %258 = vmatprep.mubr.bf16.mxu0 %v43_v63  ;;  %322 = vmatprep.mubr.bf16.mxu1 %v59_v0 }
  0x3c   :  { %524 = vperm.xlu1 %1184, %v382_v15   ;;  %519 = vperm.xlu0 %1183, %v381_v16  }
  0x40   :  { %534 = vperm.xlu1 %1184, %v384_v21   ;;  %529 = vperm.xlu0 %1183, %v383_v22  }
  0x42   :  { %259 = vmatmul.mubr.bf16.gmra.mxu0 %v42_v7  ;;  %323 = vmatmul.mubr.bf16.gmra.mxu1 %v58_v8 }
  0x43   :  { %266 = vmatprep.mubr.bf16.mxu0 %v45_v9  ;;  %330 = vmatprep.mubr.bf16.mxu1 %v61_v10 }
  0x44   :  { %544 = vperm.xlu1 %1184, %v386_v25   ;;  %539 = vperm.xlu0 %1183, %v385_v26  }
  0x4a   :  { %267 = vmatmul.mubr.bf16.gmra.mxu0 %v44_v17  ;;  %331 = vmatmul.mubr.bf16.gmra.mxu1 %v60_v18 }
  0x4b   :  { %274 = vmatprep.mubr.bf16.mxu0 %v47_v19  ;;  %338 = vmatprep.mubr.bf16.mxu1 %v63_v20 }
  0x52   :  { %275 = vmatmul.mubr.bf16.gmra.mxu0 %v46_v27  ;;  %339 = vmatmul.mubr.bf16.gmra.mxu1 %v62_v28 }
  0x53   :  { %282 = vmatprep.mubr.bf16.mxu0 %v49_v29  ;;  %346 = vmatprep.mubr.bf16.mxu1 %v65_v30 }
  0x5a   :  { %283 = vmatmul.mubr.bf16.gmra.mxu0 %v48_v31  ;;  %347 = vmatmul.mubr.bf16.gmra.mxu1 %v64_v32 }
  0x81   :  { %v390_v33 = vpop.permute.xlu0 %389  ;;  %v400_v34 = vpop.permute.xlu1 %399 }
  0x85   :  { %v395_v35 = vpop.permute.xlu0 %394  ;;  %v1419_v36 = vpop.permute.xlu1 %404 }
  0x89   :  { %v1421_v37 = vpop.permute.xlu0 %409  ;;  %v1423_v38 = vpop.permute.xlu1 %414 }
  0x8d   :  { %v1425_v39 = vpop.permute.xlu0 %419  ;;  %v1427_v40 = vpop.permute.xlu1 %424 }
  0x91   :  { %v1429_v41 = vpop.permute.xlu0 %429  ;;  %v1431_v42 = vpop.permute.xlu1 %434 }
  0x95   :  { %v1433_v43 = vpop.permute.xlu0 %439  ;;  %v1435_v44 = vpop.permute.xlu1 %444 }
  0x99   :  { %v1437_v45 = vpop.permute.xlu0 %449  ;;  %v1439_v46 = vpop.permute.xlu1 %454 }
  0x9f   :  { %v1441_v47 = vpop.permute.xlu0 %459  ;;  %v1443_v52 = vpop.permute.xlu1 %464 }
  0xa3   :  { %v470_v53 = vpop.permute.xlu0 %469  ;;  %v475_v5 = vpop.permute.xlu1 %474 }
  0xa7   :  { %v480_v10 = vpop.permute.xlu0 %479 }
  0xe2   :  { %v1070_v48 = vpop.f32.mrf.mxu0  ;;  %v1118_v49 = vpop.f32.mrf.mxu1 }
  0xe4   :  { %v1071_v50 = vpop.f32.mrf.mxu0  ;;  %v1119_v51 = vpop.f32.mrf.mxu1 }
  0xe5   :  { %v1072_v54 = vadd.f32 %v1071_v50, %v1070_v48  ;;  %v1120_v55 = vadd.f32 %v1119_v51, %v1118_v49 }
  0xe6   :  { %v1073_v57 = vpop.f32.mrf.mxu0  ;;  %v1121_v58 = vpop.f32.mrf.mxu1 }
  0xe7   :  { %v547_v59 = vmul.f32 %v1072_v54, %v390_v33  ;;  %v563_v60 = vmul.f32 %v1120_v55, %v470_v53  ;;  %v490_v55 = vpop.permute.xlu0 %489 }
  0xe8   :  { %v1074_v61 = vpop.f32.mrf.mxu0  ;;  %v1122_v62 = vpop.f32.mrf.mxu1 }
  0xe9   :  { %v586_v63 = vadd.f32 %v1448_v56, %v547_v59  ;;  %v602_v0 = vadd.f32 %v1448_v56, %v563_v60  ;;  %v1075_v1 = vadd.f32 %v1074_v61, %v1073_v57  ;;  %v1123_v2 = vadd.f32 %v1122_v62, %v1121_v58 }
  0xea   :  { %v1076_v3 = vpop.f32.mrf.mxu0  ;;  %v1124_v4 = vpop.f32.mrf.mxu1 }
  0xeb   :  { %v548_v6 = vmul.f32 %v1075_v1, %v395_v35  ;;  %v564_v7 = vmul.f32 %v1123_v2, %v475_v5  ;;  %v650_v11 = vmul.f32 0.25, %v586_v63  ;;  %v666_v12 = vmul.f32 0.25, %v602_v0 }
  0xec   :  { %v1077_v8 = vpop.f32.mrf.mxu0  ;;  %v1125_v9 = vpop.f32.mrf.mxu1  ;;  %vm618_vm0 = vcmp.gt.f32.partialorder %v586_v63, 0.0  ;;  %vm634_vm1 = vcmp.gt.f32.partialorder %v602_v0, 0.0 }
  0xed   :  { %v1078_v13 = vadd.f32 %v1077_v8, %v1076_v3  ;;  %v1126_v14 = vadd.f32 %v1125_v9, %v1124_v4  ;;  %v587_v15 = vadd.f32 %v1448_v56, %v548_v6  ;;  %v603_v16 = vadd.f32 %v1448_v56, %v564_v7 }
  0xee   :  { %v1079_v17 = vpop.f32.mrf.mxu0  ;;  %v1127_v18 = vpop.f32.mrf.mxu1  ;;  %v682_v25 = vsel %vm618_vm0, %v586_v63, %v650_v11  ;;  %v698_v26 = vsel %vm634_vm1, %v602_v0, %v666_v12 }
  0xef   :  { %v549_v19 = vmul.f32 %v1078_v13, %v400_v34  ;;  %v565_v20 = vmul.f32 %v1126_v14, %v480_v10  ;;  %vm619_vm2 = vcmp.gt.f32.partialorder %v587_v15, 0.0  ;;  %v651_v21 = vmul.f32 0.25, %v587_v15  ;;  %v485_v34 = vpop.permute.xlu1 %484 }
  0xf0   :  { %vm635_vm3 = vcmp.gt.f32.partialorder %v603_v16, 0.0  ;;  %v667_v22 = vmul.f32 0.25, %v603_v16  ;;  %v1080_v23 = vpop.f32.mrf.mxu0  ;;  %v1128_v24 = vpop.f32.mrf.mxu1 }
  0xf1   :  { %v1081_v27 = vadd.f32 %v1080_v23, %v1079_v17  ;;  %v1129_v28 = vadd.f32 %v1128_v24, %v1127_v18  ;;  %v683_v29 = vsel %vm619_vm2, %v587_v15, %v651_v21  ;;  %v588_v31 = vadd.f32 %v1448_v56, %v549_v19 }
  0xf2   :  { %v699_v30 = vsel %vm635_vm3, %v603_v16, %v667_v22  ;;  %v604_v32 = vadd.f32 %v1448_v56, %v565_v20  ;;  %v1082_v33 = vpop.f32.mrf.mxu0  ;;  %v1130_v35 = vpop.f32.mrf.mxu1  ;;  %v962_v48 = vpack.c.bf16 %v683_v29, %v682_v25 }
  0xf3   :  { %v1002_v49 = vpack.c.bf16 %v699_v30, %v698_v26  ;;  %v550_v50 = vmul.f32 %v1081_v27, %v1419_v36  ;;  %v566_v51 = vmul.f32 %v1129_v28, %v485_v34  ;;  %v652_v59 = vmul.f32 0.25, %v588_v31  ;;  %v500_v22 = vpop.permute.xlu0 %499 }
  0xf4   :  { %v1083_v53 = vpop.f32.mrf.mxu0  ;;  %v1131_v54 = vpop.f32.mrf.mxu1  ;;  %963 = vst [vmem:[%s1547_s4] sm:$0xff] %v962_v48   ;;  %v668_v60 = vmul.f32 0.25, %v604_v32  ;;  %vm620_vm4 = vcmp.gt.f32.partialorder %v588_v31, 0.0  ;;  %vm636_vm5 = vcmp.gt.f32.partialorder %v604_v32, 0.0 }
  0xf5   :  { %1046 = vst [vmem:[%s1547_s4 + $0x40] sm:$0xff] %v1002_v49   ;;  %v1084_v57 = vadd.f32 %v1083_v53, %v1082_v33  ;;  %v1132_v58 = vadd.f32 %v1131_v54, %v1130_v35  ;;  %v589_v61 = vadd.f32 %v1448_v56, %v550_v50  ;;  %v605_v36 = vadd.f32 %v1448_v56, %v566_v51 }
  0xf6   :  { %v1085_v62 = vpop.f32.mrf.mxu0  ;;  %v1133_v63 = vpop.f32.mrf.mxu1  ;;  %v684_v10 = vsel %vm620_vm4, %v588_v31, %v652_v59  ;;  %v700_v11 = vsel %vm636_vm5, %v604_v32, %v668_v60 }
  0xf7   :  { %v551_v0 = vmul.f32 %v1084_v57, %v1421_v37  ;;  %v567_v1 = vmul.f32 %v1132_v58, %v490_v55  ;;  %vm621_vm6 = vcmp.gt.f32.partialorder %v589_v61, 0.0  ;;  %v653_v2 = vmul.f32 0.25, %v589_v61  ;;  %v495_v37 = vpop.permute.xlu1 %494 }
  0xf8   :  { %vm637_vm7 = vcmp.gt.f32.partialorder %v605_v36, 0.0  ;;  %v669_v3 = vmul.f32 0.25, %v605_v36  ;;  %v1086_v4 = vpop.f32.mrf.mxu0  ;;  %v1134_v5 = vpop.f32.mrf.mxu1 }
  0xf9   :  { %v590_v6 = vadd.f32 %v1448_v56, %v551_v0  ;;  %v606_v7 = vadd.f32 %v1448_v56, %v567_v1  ;;  %v1087_v8 = vadd.f32 %v1086_v4, %v1085_v62  ;;  %v1135_v9 = vadd.f32 %v1134_v5, %v1133_v63  ;;  %v510_v1 = vpop.permute.xlu0 %509 }
  0xfa   :  { %v685_v12 = vsel %vm621_vm6, %v589_v61, %v653_v2  ;;  %v701_v13 = vsel %vm637_vm7, %v605_v36, %v669_v3  ;;  %v1088_v14 = vpop.f32.mrf.mxu0  ;;  %v1136_v15 = vpop.f32.mrf.mxu1 }
  0xfb   :  { %v967_v16 = vpack.c.bf16 %v685_v12, %v684_v10  ;;  %v1007_v17 = vpack.c.bf16 %v701_v13, %v700_v11  ;;  %v552_v18 = vmul.f32 %v1087_v8, %v1423_v38  ;;  %v568_v19 = vmul.f32 %v1135_v9, %v495_v37 }
  0xfc   :  { %v1089_v20 = vpop.f32.mrf.mxu0  ;;  %v1137_v21 = vpop.f32.mrf.mxu1  ;;  %v654_v23 = vmul.f32 0.25, %v590_v6  ;;  %v670_v24 = vmul.f32 0.25, %v606_v7  ;;  %vm622_vm8 = vcmp.gt.f32.partialorder %v590_v6, 0.0  ;;  %vm638_vm9 = vcmp.gt.f32.partialorder %v606_v7, 0.0 }
  0xfd   :  { %1039 = vst [vmem:[%s1547_s4 + $0x8] sm:$0xff] %v967_v16   ;;  %1047 = vst [vmem:[%s1547_s4 + $0x48] sm:$0xff] %v1007_v17   ;;  %v1090_v25 = vadd.f32 %v1089_v20, %v1088_v14  ;;  %v1138_v26 = vadd.f32 %v1137_v21, %v1136_v15  ;;  %v591_v38 = vadd.f32 %v1448_v56, %v552_v18 }
  0xfe   :  { %v607_v27 = vadd.f32 %v1448_v56, %v568_v19  ;;  %v1091_v28 = vpop.f32.mrf.mxu0  ;;  %v1139_v29 = vpop.f32.mrf.mxu1  ;;  %v686_v48 = vsel %vm622_vm8, %v590_v6, %v654_v23  ;;  %v702_v49 = vsel %vm638_vm9, %v606_v7, %v670_v24 }
  0xff   :  { %v553_v30 = vmul.f32 %v1090_v25, %v1425_v39  ;;  %v569_v31 = vmul.f32 %v1138_v26, %v500_v22  ;;  %vm623_vm10 = vcmp.gt.f32.partialorder %v591_v38, 0.0  ;;  %v655_v32 = vmul.f32 0.25, %v591_v38  ;;  %v505_v39 = vpop.permute.xlu1 %504 }
 0x100   :  { %vm639_vm11 = vcmp.gt.f32.partialorder %v607_v27, 0.0  ;;  %v671_v33 = vmul.f32 0.25, %v607_v27  ;;  %v1092_v35 = vpop.f32.mrf.mxu0  ;;  %v1140_v34 = vpop.f32.mrf.mxu1 }
 0x101   :  { %v1093_v50 = vadd.f32 %v1092_v35, %v1091_v28  ;;  %v1141_v51 = vadd.f32 %v1140_v34, %v1139_v29  ;;  %v687_v53 = vsel %vm623_vm10, %v591_v38, %v655_v32  ;;  %v592_v55 = vadd.f32 %v1448_v56, %v553_v30  ;;  %v520_v29 = vpop.permute.xlu0 %519 }
 0x102   :  { %v703_v54 = vsel %vm639_vm11, %v607_v27, %v671_v33  ;;  %v608_v57 = vadd.f32 %v1448_v56, %v569_v31  ;;  %v1094_v58 = vpop.f32.mrf.mxu0  ;;  %v1142_v59 = vpop.f32.mrf.mxu1  ;;  %v972_v60 = vpack.c.bf16 %v687_v53, %v686_v48 }
 0x103   :  { %v1012_v61 = vpack.c.bf16 %v703_v54, %v702_v49  ;;  %v554_v36 = vmul.f32 %v1093_v50, %v1427_v40  ;;  %v570_v62 = vmul.f32 %v1141_v51, %v505_v39  ;;  %v656_v4 = vmul.f32 0.25, %v592_v55 }
 0x104   :  { %v1095_v63 = vpop.f32.mrf.mxu0  ;;  %v1143_v0 = vpop.f32.mrf.mxu1  ;;  %1040 = vst [vmem:[%s1547_s4 + $0x10] sm:$0xff] %v972_v60   ;;  %v672_v5 = vmul.f32 0.25, %v608_v57  ;;  %vm624_vm12 = vcmp.gt.f32.partialorder %v592_v55, 0.0  ;;  %vm640_vm13 = vcmp.gt.f32.partialorder %v608_v57, 0.0 }
 0x105   :  { %1048 = vst [vmem:[%s1547_s4 + $0x50] sm:$0xff] %v1012_v61   ;;  %v1096_v2 = vadd.f32 %v1095_v63, %v1094_v58  ;;  %v1144_v3 = vadd.f32 %v1143_v0, %v1142_v59  ;;  %v593_v6 = vadd.f32 %v1448_v56, %v554_v36  ;;  %v609_v40 = vadd.f32 %v1448_v56, %v570_v62 }
 0x106   :  { %v1097_v7 = vpop.f32.mrf.mxu0  ;;  %v1145_v8 = vpop.f32.mrf.mxu1  ;;  %v688_v18 = vsel %vm624_vm12, %v592_v55, %v656_v4  ;;  %v704_v19 = vsel %vm640_vm13, %v608_v57, %v672_v5 }
 0x107   :  { %v555_v9 = vmul.f32 %v1096_v2, %v1429_v41  ;;  %v571_v10 = vmul.f32 %v1144_v3, %v510_v1  ;;  %vm625_vm14 = vcmp.gt.f32.partialorder %v593_v6, 0.0  ;;  %v657_v11 = vmul.f32 0.25, %v593_v6  ;;  %v515_v41 = vpop.permute.xlu1 %514 }
 0x108   :  { %vm641_vm15 = vcmp.gt.f32.partialorder %v609_v40, 0.0  ;;  %v673_v12 = vmul.f32 0.25, %v609_v40  ;;  %v1098_v13 = vpop.f32.mrf.mxu0  ;;  %v1146_v14 = vpop.f32.mrf.mxu1 }
 0x109   :  { %v594_v15 = vadd.f32 %v1448_v56, %v555_v9  ;;  %v610_v37 = vadd.f32 %v1448_v56, %v571_v10  ;;  %v1099_v16 = vadd.f32 %v1098_v13, %v1097_v7  ;;  %v1147_v17 = vadd.f32 %v1146_v14, %v1145_v8 }
 0x10a   :  { %v689_v20 = vsel %vm625_vm14, %v593_v6, %v657_v11  ;;  %v705_v21 = vsel %vm641_vm15, %v609_v40, %v673_v12  ;;  %v1100_v22 = vpop.f32.mrf.mxu0  ;;  %v1148_v23 = vpop.f32.mrf.mxu1 }
 0x10b   :  { %v977_v24 = vpack.c.bf16 %v689_v20, %v688_v18  ;;  %v1017_v25 = vpack.c.bf16 %v705_v21, %v704_v19  ;;  %v556_v26 = vmul.f32 %v1099_v16, %v1431_v42  ;;  %v572_v38 = vmul.f32 %v1147_v17, %v515_v41  ;;  %v530_v40 = vpop.permute.xlu0 %529 }
 0x10c   :  { %v1101_v27 = vpop.f32.mrf.mxu0  ;;  %v1149_v28 = vpop.f32.mrf.mxu1  ;;  %v658_v30 = vmul.f32 0.25, %v594_v15  ;;  %v674_v31 = vmul.f32 0.25, %v610_v37  ;;  %vm626_vm0 = vcmp.gt.f32.partialorder %v594_v15, 0.0  ;;  %vm642_vm1 = vcmp.gt.f32.partialorder %v610_v37, 0.0 }
 0x10d   :  { %1041 = vst [vmem:[%s1547_s4 + $0x18] sm:$0xff] %v977_v24   ;;  %1049 = vst [vmem:[%s1547_s4 + $0x58] sm:$0xff] %v1017_v25   ;;  %v1102_v32 = vadd.f32 %v1101_v27, %v1100_v22  ;;  %v1150_v33 = vadd.f32 %v1149_v28, %v1148_v23  ;;  %v595_v42 = vadd.f32 %v1448_v56, %v556_v26 }
 0x10e   :  { %v611_v35 = vadd.f32 %v1448_v56, %v572_v38  ;;  %v1103_v34 = vpop.f32.mrf.mxu0  ;;  %v1151_v48 = vpop.f32.mrf.mxu1  ;;  %v690_v57 = vsel %vm626_vm0, %v594_v15, %v658_v30  ;;  %v706_v58 = vsel %vm642_vm1, %v610_v37, %v674_v31 }
 0x10f   :  { %v557_v49 = vmul.f32 %v1102_v32, %v1433_v43  ;;  %v573_v50 = vmul.f32 %v1150_v33, %v520_v29  ;;  %vm627_vm2 = vcmp.gt.f32.partialorder %v595_v42, 0.0  ;;  %v659_v51 = vmul.f32 0.25, %v595_v42  ;;  %v525_v43 = vpop.permute.xlu1 %524  ;;  %v540_v33 = vpop.permute.xlu0 %539 }
 0x110   :  { %vm643_vm3 = vcmp.gt.f32.partialorder %v611_v35, 0.0  ;;  %v675_v53 = vmul.f32 0.25, %v611_v35  ;;  %v1104_v54 = vpop.f32.mrf.mxu0  ;;  %v1152_v55 = vpop.f32.mrf.mxu1 }
 0x111   :  { %v1105_v59 = vadd.f32 %v1104_v54, %v1103_v34  ;;  %v1153_v39 = vadd.f32 %v1152_v55, %v1151_v48  ;;  %v691_v60 = vsel %vm627_vm2, %v595_v42, %v659_v51  ;;  %v596_v36 = vadd.f32 %v1448_v56, %v557_v49 }
 0x112   :  { %v707_v61 = vsel %vm643_vm3, %v611_v35, %v675_v53  ;;  %v612_v62 = vadd.f32 %v1448_v56, %v573_v50  ;;  %v1106_v63 = vpop.f32.mrf.mxu0  ;;  %v1154_v0 = vpop.f32.mrf.mxu1  ;;  %v982_v1 = vpack.c.bf16 %v691_v60, %v690_v57 }
 0x113   :  { %v1022_v2 = vpack.c.bf16 %v707_v61, %v706_v58  ;;  %v558_v3 = vmul.f32 %v1105_v59, %v1435_v44  ;;  %v574_v4 = vmul.f32 %v1153_v39, %v525_v43  ;;  %v660_v9 = vmul.f32 0.25, %v596_v36 }
 0x114   :  { %v1107_v5 = vpop.f32.mrf.mxu0  ;;  %v1155_v6 = vpop.f32.mrf.mxu1  ;;  %1042 = vst [vmem:[%s1547_s4 + $0x20] sm:$0xff] %v982_v1   ;;  %v676_v10 = vmul.f32 0.25, %v612_v62  ;;  %vm628_vm4 = vcmp.gt.f32.partialorder %v596_v36, 0.0  ;;  %vm644_vm5 = vcmp.gt.f32.partialorder %v612_v62, 0.0 }
 0x115   :  { %1050 = vst [vmem:[%s1547_s4 + $0x60] sm:$0xff] %v1022_v2   ;;  %v1108_v7 = vadd.f32 %v1107_v5, %v1106_v63  ;;  %v1156_v8 = vadd.f32 %v1155_v6, %v1154_v0  ;;  %v597_v11 = vadd.f32 %v1448_v56, %v558_v3  ;;  %v613_v44 = vadd.f32 %v1448_v56, %v574_v4 }
 0x116   :  { %v1109_v12 = vpop.f32.mrf.mxu0  ;;  %v1157_v13 = vpop.f32.mrf.mxu1  ;;  %v692_v23 = vsel %vm628_vm4, %v596_v36, %v660_v9  ;;  %v708_v41 = vsel %vm644_vm5, %v612_v62, %v676_v10 }
 0x117   :  { %v559_v14 = vmul.f32 %v1108_v7, %v1437_v45  ;;  %v575_v15 = vmul.f32 %v1156_v8, %v530_v40  ;;  %vm629_vm6 = vcmp.gt.f32.partialorder %v597_v11, 0.0  ;;  %v661_v37 = vmul.f32 0.25, %v597_v11  ;;  %v535_v45 = vpop.permute.xlu1 %534 }
 0x118   :  { %vm645_vm7 = vcmp.gt.f32.partialorder %v613_v44, 0.0  ;;  %v677_v16 = vmul.f32 0.25, %v613_v44  ;;  %v1110_v17 = vpop.f32.mrf.mxu0  ;;  %v1158_v18 = vpop.f32.mrf.mxu1 }
 0x119   :  { %v598_v19 = vadd.f32 %v1448_v56, %v559_v14  ;;  %v614_v20 = vadd.f32 %v1448_v56, %v575_v15  ;;  %v1111_v21 = vadd.f32 %v1110_v17, %v1109_v12  ;;  %v1159_v22 = vadd.f32 %v1158_v18, %v1157_v13 }
 0x11a   :  { %v693_v24 = vsel %vm629_vm6, %v597_v11, %v661_v37  ;;  %v709_v25 = vsel %vm645_vm7, %v613_v44, %v677_v16  ;;  %v1112_v26 = vpop.f32.mrf.mxu0  ;;  %v1160_v38 = vpop.f32.mrf.mxu1 }
 0x11b   :  { %v987_v27 = vpack.c.bf16 %v693_v24, %v692_v23  ;;  %v1027_v28 = vpack.c.bf16 %v709_v25, %v708_v41  ;;  %v560_v29 = vmul.f32 %v1111_v21, %v1439_v46  ;;  %v576_v30 = vmul.f32 %v1159_v22, %v535_v45  ;;  %v545_v1 = vpop.permute.xlu1 %544 }
 0x11c   :  { %v1113_v31 = vpop.f32.mrf.mxu0  ;;  %v1161_v32 = vpop.f32.mrf.mxu1  ;;  %v662_v42 = vmul.f32 0.25, %v598_v19  ;;  %v678_v35 = vmul.f32 0.25, %v614_v20  ;;  %vm630_vm8 = vcmp.gt.f32.partialorder %v598_v19, 0.0  ;;  %vm646_vm9 = vcmp.gt.f32.partialorder %v614_v20, 0.0 }
 0x11d   :  { %1043 = vst [vmem:[%s1547_s4 + $0x28] sm:$0xff] %v987_v27   ;;  %1051 = vst [vmem:[%s1547_s4 + $0x68] sm:$0xff] %v1027_v28   ;;  %v1114_v34 = vadd.f32 %v1113_v31, %v1112_v26  ;;  %v1162_v48 = vadd.f32 %v1161_v32, %v1160_v38  ;;  %v599_v46 = vadd.f32 %v1448_v56, %v560_v29 }
 0x11e   :  { %v615_v49 = vadd.f32 %v1448_v56, %v576_v30  ;;  %v1115_v50 = vpop.f32.mrf.mxu0  ;;  %v1163_v51 = vpop.f32.mrf.mxu1  ;;  %v694_v39 = vsel %vm630_vm8, %v598_v19, %v662_v42  ;;  %v710_v60 = vsel %vm646_vm9, %v614_v20, %v678_v35 }
 0x11f   :  { %v561_v53 = vmul.f32 %v1114_v34, %v1441_v47  ;;  %v577_v54 = vmul.f32 %v1162_v48, %v540_v33  ;;  %vm631_vm10 = vcmp.gt.f32.partialorder %v599_v46, 0.0  ;;  %v663_v55 = vmul.f32 0.25, %v599_v46 }
 0x120   :  { %vm647_vm11 = vcmp.gt.f32.partialorder %v615_v49, 0.0  ;;  %v679_v57 = vmul.f32 0.25, %v615_v49  ;;  %v1116_v58 = vpop.f32.mrf.mxu0  ;;  %v1164_v59 = vpop.f32.mrf.mxu1 }
 0x121   :  { %v1117_v61 = vadd.f32 %v1116_v58, %v1115_v50  ;;  %v1165_v36 = vadd.f32 %v1164_v59, %v1163_v51  ;;  %v695_v62 = vsel %vm631_vm10, %v599_v46, %v663_v55  ;;  %v600_v0 = vadd.f32 %v1448_v56, %v561_v53 }
 0x122   :  { %v711_v63 = vsel %vm647_vm11, %v615_v49, %v679_v57  ;;  %v616_v43 = vadd.f32 %v1448_v56, %v577_v54  ;;  %v992_v2 = vpack.c.bf16 %v695_v62, %v694_v39 }
 0x123   :  { %v1032_v47 = vpack.c.bf16 %v711_v63, %v710_v60  ;;  %v562_v3 = vmul.f32 %v1117_v61, %v1443_v52  ;;  %v578_v4 = vmul.f32 %v1165_v36, %v545_v1  ;;  %v664_v5 = vmul.f32 0.25, %v600_v0 }
 0x124   :  { %1044 = vst [vmem:[%s1547_s4 + $0x30] sm:$0xff] %v992_v2   ;;  %v680_v6 = vmul.f32 0.25, %v616_v43  ;;  %vm632_vm12 = vcmp.gt.f32.partialorder %v600_v0, 0.0  ;;  %vm648_vm13 = vcmp.gt.f32.partialorder %v616_v43, 0.0 }
 0x125   :  { %1052 = vst [vmem:[%s1547_s4 + $0x70] sm:$0xff] %v1032_v47   ;;  %v601_v40 = vadd.f32 %v1448_v56, %v562_v3  ;;  %v617_v7 = vadd.f32 %v1448_v56, %v578_v4  ;;  %v696_v9 = vsel %vm632_vm12, %v600_v0, %v664_v5 }
 0x126   :  { %v712_v10 = vsel %vm648_vm13, %v616_v43, %v680_v6 }
 0x127   :  { %vm633_vm14 = vcmp.gt.f32.partialorder %v601_v40, 0.0  ;;  %v665_v8 = vmul.f32 0.25, %v601_v40  ;;  %vm649_vm15 = vcmp.gt.f32.partialorder %v617_v7, 0.0  ;;  %v681_v52 = vmul.f32 0.25, %v617_v7 }
 0x129   :  { %v697_v11 = vsel %vm633_vm14, %v601_v40, %v665_v8  ;;  %v713_v44 = vsel %vm649_vm15, %v617_v7, %v681_v52 }
 0x12a   :  { %v997_v12 = vpack.c.bf16 %v697_v11, %v696_v9  ;;  %v1037_v13 = vpack.c.bf16 %v713_v44, %v712_v10 }
 0x12c   :  { %1045 = vst [vmem:[%s1547_s4 + $0x38] sm:$0xff] %v997_v12   ;;  %1053 = vst [vmem:[%s1547_s4 + $0x78] sm:$0xff] %v1037_v13  }

</bundles_post_ra>
